<compile_context>
chip_gen: v6e
topology: v6e:2x2x1
jax: 0.10.0
libtpu: 0.0.40
codegen_flags: <defaults>
</compile_context>

<pallas_src>
import math
import jax
import jax.numpy as jnp
from jax.experimental import pallas as pl
from jax.experimental.pallas import tpu as pltpu

EPS = 1e-5
OUT_DIM = 2        # real fc3 output width
OUT_PAD = 128      # lane-dense padded fc3 output width
HID2_PAD = 128     # lane-dense padded fc2 output width (real = hidden // 2)


def _sigmoid(x):
    # 1 EUP push (tanh) + 2 VALU ops; cheaper and more accurate than exp+recip.
    return 0.5 * jnp.tanh(0.5 * x) + 0.5


def simple_lstm_kernel(x_ref, gamma_ref, beta_ref,
                       wih_ref, whh_ref, blstm_ref,
                       w1_ref, b1_ref, w2_ref, b2_ref, w3_ref, b3_ref,
                       out_ref, proj_ref):
    x = x_ref[...]                                 # (T, B, D) float32
    T, B, D = x.shape
    H = whh_ref.shape[0]                           # whh is (H, 4H)
    wdt = wih_ref.dtype                            # bf16 weights

    # ---- LayerNorm over last dim (input_dim), f32 ----
    mean = jnp.mean(x, axis=-1, keepdims=True)
    var = jnp.mean(jnp.square(x - mean), axis=-1, keepdims=True)
    xn = (x - mean) * jax.lax.rsqrt(var + EPS)
    xn = xn * gamma_ref[...] + beta_ref[...]       # (1,D) broadcasts over (T,B,D)

    # ---- Hoisted input projection: one (T*B,D)x(D,4H) matmul + bias, staged
    #      into a VMEM scratch so it does not occupy vregs across the loop ----
    xn2d = xn.reshape(T * B, D).astype(wdt)        # B==8 keeps this reshape aligned
    proj_ref[...] = (jnp.dot(xn2d, wih_ref[...],
                             preferred_element_type=jnp.float32)
                     + blstm_ref[...])             # (T*B, 4H) f32, rows grouped by t

    # ---- LSTM recurrence (PyTorch gate order: i, f, g, o), fully unrolled.
    #      W_hh is read from VMEM each step (streamed under the matmul). ----
    h = jnp.zeros((B, H), jnp.float32)
    c = jnp.zeros((B, H), jnp.float32)
    for t in range(T):                             # T is static -> unrolled
        gates = proj_ref[t * B:(t + 1) * B, :] + jnp.dot(
            h.astype(wdt), whh_ref[...],
            preferred_element_type=jnp.float32)    # (B, 4H) f32
        i = _sigmoid(gates[:, 0:H])
        f = _sigmoid(gates[:, H:2 * H])
        g = jnp.tanh(gates[:, 2 * H:3 * H])
        o = _sigmoid(gates[:, 3 * H:4 * H])
        c = f * c + i * g
        h = o * jnp.tanh(c)

    # ---- MLP head: fc1 -> (dropout=id) -> relu -> fc2 -> (dropout=id) -> relu -> fc3
    #      fc2/fc3 widths padded to 128 lanes at init (zeros), sliced in wrapper ----
    z1 = jnp.maximum(jnp.dot(h.astype(wdt), w1_ref[...],
                             preferred_element_type=jnp.float32) + b1_ref[...], 0.0)
    z2 = jnp.maximum(jnp.dot(z1.astype(wdt), w2_ref[...],
                             preferred_element_type=jnp.float32) + b2_ref[...], 0.0)
    out = jnp.dot(z2.astype(wdt), w3_ref[...],
                  preferred_element_type=jnp.float32) + b3_ref[...]   # (B, OUT_PAD)
    out_ref[...] = out.astype(out_ref.dtype)       # lane-dense (B, 128) store


def simple_lstm_forward(x, params, hidden=128):
    B, T, D = x.shape
    # Host/XLA-side layout plumbing: put time on the leading axis.
    x_tbd = jnp.transpose(x, (1, 0, 2))            # (T, B, D)
    args = (x_tbd,
            params["ln_gamma"], params["ln_beta"],
            params["w_ih_t"], params["w_hh_t"], params["b_lstm"],
            params["w1_t"], params["b1"],
            params["w2_t"], params["b2"],
            params["w3_t"], params["b3"])
    vmem = pl.BlockSpec(memory_space=pltpu.MemorySpace.VMEM)
    out_pad = pl.pallas_call(
        simple_lstm_kernel,
        out_shape=jax.ShapeDtypeStruct((B, OUT_PAD), jnp.float32),
        in_specs=[vmem] * len(args),
        out_specs=vmem,
        scratch_shapes=[pltpu.VMEM((T * B, 4 * hidden), jnp.float32)],
    )(*args)
    return out_pad[:, :OUT_DIM]                    # slice padded lanes in wrapper


def init_params(key, input_dim=24, hidden=128):
    ks = jax.random.split(key, 10)

    def u(k, shape, scale):
        return jax.random.uniform(k, shape, jnp.float32, -scale, scale)

    s = 1.0 / math.sqrt(hidden)
    w_ih = u(ks[0], (4 * hidden, input_dim), s)     # PyTorch layout
    w_hh = u(ks[1], (4 * hidden, hidden), s)
    b_ih = u(ks[2], (4 * hidden,), s)
    b_hh = u(ks[3], (4 * hidden,), s)

    w1 = u(ks[4], (hidden, hidden), s)
    b1 = u(ks[5], (hidden,), s)
    w2 = u(ks[6], (hidden // 2, hidden), s)
    b2 = u(ks[7], (hidden // 2,), s)
    s3 = 1.0 / math.sqrt(hidden // 2)
    w3 = u(ks[8], (OUT_DIM, hidden // 2), s3)
    b3 = u(ks[9], (OUT_DIM,), s3)

    # Pad fc2 output / fc3 input+output to 128 lanes (zeros beyond real width).
    w2_t_pad = jnp.zeros((hidden, HID2_PAD), jnp.float32).at[:, :hidden // 2].set(w2.T)
    b2_pad = jnp.zeros((1, HID2_PAD), jnp.float32).at[0, :hidden // 2].set(b2)
    w3_t_pad = jnp.zeros((HID2_PAD, OUT_PAD), jnp.float32).at[:hidden // 2, :OUT_DIM].set(w3.T)
    b3_pad = jnp.zeros((1, OUT_PAD), jnp.float32).at[0, :OUT_DIM].set(b3)

    bf16 = jnp.bfloat16
    return dict(
        ln_gamma=jnp.ones((1, input_dim), jnp.float32),
        ln_beta=jnp.zeros((1, input_dim), jnp.float32),
        w_ih_t=w_ih.T.astype(bf16),                 # (D, 4H) bf16
        w_hh_t=w_hh.T.astype(bf16),                 # (H, 4H) bf16
        b_lstm=(b_ih + b_hh).reshape(1, -1),        # (1, 4H) f32
        w1_t=w1.T.astype(bf16), b1=b1.reshape(1, -1),
        w2_t=w2_t_pad.astype(bf16), b2=b2_pad,
        w3_t=w3_t_pad.astype(bf16), b3=b3_pad,
    )


def reference_forward(x, params):
    """Pure-JAX f32 reference matching PyTorch semantics (eval mode).

    Uses the same (bf16-quantized) weight values as the kernel, upcast to f32,
    with HIGHEST-precision matmuls, so the comparison isolates kernel error.
    """
    hp = jax.lax.Precision.HIGHEST
    x = x.astype(jnp.float32)
    mean = jnp.mean(x, axis=-1, keepdims=True)
    var = jnp.mean(jnp.square(x - mean), axis=-1, keepdims=True)
    xn = (x - mean) * jax.lax.rsqrt(var + EPS)
    xn = xn * params["ln_gamma"] + params["ln_beta"]

    wih = params["w_ih_t"].astype(jnp.float32)
    whh = params["w_hh_t"].astype(jnp.float32)
    b = params["b_lstm"]
    B, T, D = x.shape
    H = whh.shape[0]
    h = jnp.zeros((B, H), jnp.float32)
    c = jnp.zeros((B, H), jnp.float32)
    for t in range(T):
        gates = (jnp.dot(xn[:, t, :], wih, precision=hp)
                 + jnp.dot(h, whh, precision=hp) + b)
        i = jax.nn.sigmoid(gates[:, 0:H])
        f = jax.nn.sigmoid(gates[:, H:2 * H])
        g = jnp.tanh(gates[:, 2 * H:3 * H])
        o = jax.nn.sigmoid(gates[:, 3 * H:4 * H])
        c = f * c + i * g
        h = o * jnp.tanh(c)

    w1 = params["w1_t"].astype(jnp.float32)
    w2 = params["w2_t"].astype(jnp.float32)
    w3 = params["w3_t"].astype(jnp.float32)
    z1 = jnp.maximum(jnp.dot(h, w1, precision=hp) + params["b1"], 0.0)
    z2 = jnp.maximum(jnp.dot(z1, w2, precision=hp) + params["b2"], 0.0)
    out = jnp.dot(z2, w3, precision=hp) + params["b3"]
    return out[:, :OUT_DIM]


if __name__ == "__main__":
    key = jax.random.PRNGKey(0)
    kx, kp = jax.random.split(key)

    # B multiple of 8 (sublane tile); module defaults input_dim=24, hidden=128.
    B, T, D, H = 8, 8, 24, 128
    x = jax.random.normal(kx, (B, T, D), jnp.float32)
    params = init_params(kp, input_dim=D, hidden=H)

    out = jax.block_until_ready(simple_lstm_forward(x, params, hidden=H))
    ref = reference_forward(x, params)

    assert out.shape == (B, OUT_DIM)
    assert jnp.allclose(out, ref, atol=2e-2, rtol=2e-2), (out, ref)
    print("KERNEL_OK")
</pallas_src>

<mosaic_0001>
module attributes {stable_mosaic.version = 11 : i64} {
  func.func @simple_lstm_kernel(%arg0: memref<8x8x24xf32, #tpu.memory_space<vmem>>, %arg1: memref<1x24xf32, #tpu.memory_space<vmem>>, %arg2: memref<1x24xf32, #tpu.memory_space<vmem>>, %arg3: memref<24x512xbf16, #tpu.memory_space<vmem>>, %arg4: memref<128x512xbf16, #tpu.memory_space<vmem>>, %arg5: memref<1x512xf32, #tpu.memory_space<vmem>>, %arg6: memref<128x128xbf16, #tpu.memory_space<vmem>>, %arg7: memref<1x128xf32, #tpu.memory_space<vmem>>, %arg8: memref<128x128xbf16, #tpu.memory_space<vmem>>, %arg9: memref<1x128xf32, #tpu.memory_space<vmem>>, %arg10: memref<128x128xbf16, #tpu.memory_space<vmem>>, %arg11: memref<1x128xf32, #tpu.memory_space<vmem>>, %arg12: memref<8x128xf32, #tpu.memory_space<vmem>>, %arg13: memref<64x512xf32, #tpu.memory_space<vmem>>) attributes {dimension_semantics = [], scalar_prefetch = 0 : i64, scratch_operands = 1 : i64, tpu.core_type = #tpu.core_type<tc>} {
    %c0 = arith.constant 0 : index
    %c0_0 = arith.constant 0 : index
    %c0_1 = arith.constant 0 : index
    %0 = vector.load %arg0[%c0, %c0_0, %c0_1] : memref<8x8x24xf32, #tpu.memory_space<vmem>>, vector<8x8x24xf32>
    %cst = arith.constant dense<0.000000e+00> : vector<8x8xf32>
    %1 = vector.multi_reduction <add>, %0, %cst [2] : vector<8x8x24xf32> to vector<8x8xf32>
    %2 = vector.shape_cast %1 : vector<8x8xf32> to vector<8x8x1xf32>
    %cst_2 = arith.constant 2.400000e+01 : f32
    %3 = vector.broadcast %cst_2 : f32 to vector<8x8x1xf32>
    %4 = arith.divf %2, %3 : vector<8x8x1xf32>
    %5 = vector.broadcast %4 : vector<8x8x1xf32> to vector<8x8x24xf32>
    %6 = arith.subf %0, %5 : vector<8x8x24xf32>
    %7 = arith.mulf %6, %6 : vector<8x8x24xf32>
    %cst_3 = arith.constant dense<0.000000e+00> : vector<8x8xf32>
    %8 = vector.multi_reduction <add>, %7, %cst_3 [2] : vector<8x8x24xf32> to vector<8x8xf32>
    %9 = vector.shape_cast %8 : vector<8x8xf32> to vector<8x8x1xf32>
    %cst_4 = arith.constant 2.400000e+01 : f32
    %10 = vector.broadcast %cst_4 : f32 to vector<8x8x1xf32>
    %11 = arith.divf %9, %10 : vector<8x8x1xf32>
    %12 = vector.broadcast %4 : vector<8x8x1xf32> to vector<8x8x24xf32>
    %13 = arith.subf %0, %12 : vector<8x8x24xf32>
    %cst_5 = arith.constant 9.99999974E-6 : f32
    %14 = vector.broadcast %cst_5 : f32 to vector<8x8x1xf32>
    %15 = arith.addf %11, %14 : vector<8x8x1xf32>
    %16 = math.rsqrt %15 : vector<8x8x1xf32>
    %17 = vector.broadcast %16 : vector<8x8x1xf32> to vector<8x8x24xf32>
    %18 = arith.mulf %13, %17 : vector<8x8x24xf32>
    %c0_6 = arith.constant 0 : index
    %c0_7 = arith.constant 0 : index
    %19 = vector.load %arg1[%c0_6, %c0_7] : memref<1x24xf32, #tpu.memory_space<vmem>>, vector<1x24xf32>
    %20 = vector.shape_cast %19 : vector<1x24xf32> to vector<1x1x24xf32>
    %21 = vector.broadcast %20 : vector<1x1x24xf32> to vector<8x8x24xf32>
    %22 = arith.mulf %18, %21 : vector<8x8x24xf32>
    %c0_8 = arith.constant 0 : index
    %c0_9 = arith.constant 0 : index
    %23 = vector.load %arg2[%c0_8, %c0_9] : memref<1x24xf32, #tpu.memory_space<vmem>>, vector<1x24xf32>
    %24 = vector.shape_cast %23 : vector<1x24xf32> to vector<1x1x24xf32>
    %25 = vector.broadcast %24 : vector<1x1x24xf32> to vector<8x8x24xf32>
    %26 = arith.addf %22, %25 : vector<8x8x24xf32>
    %27 = vector.shape_cast %26 : vector<8x8x24xf32> to vector<64x24xf32>
    %28 = arith.truncf %27 : vector<64x24xf32> to vector<64x24xbf16>
    %c0_10 = arith.constant 0 : index
    %c0_11 = arith.constant 0 : index
    %29 = vector.load %arg3[%c0_10, %c0_11] : memref<24x512xbf16, #tpu.memory_space<vmem>>, vector<24x512xbf16>
    %cst_12 = arith.constant dense<0.000000e+00> : vector<64x512xf32>
    %30 = tpu.matmul %28, %29, %cst_12 {dimension_numbers = #tpu.dot_dimension_numbers<[1], [0], [0], [1], [0, 0, 1, 1], [], []>} : vector<64x24xbf16>, vector<24x512xbf16>, vector<64x512xf32> -> vector<64x512xf32>
    %c0_13 = arith.constant 0 : index
    %c0_14 = arith.constant 0 : index
    %31 = vector.load %arg5[%c0_13, %c0_14] : memref<1x512xf32, #tpu.memory_space<vmem>>, vector<1x512xf32>
    %32 = vector.broadcast %31 : vector<1x512xf32> to vector<64x512xf32>
    %33 = arith.addf %30, %32 : vector<64x512xf32>
    %c0_15 = arith.constant 0 : index
    %c0_16 = arith.constant 0 : index
    %34 = vector.load %arg13[%c0_15, %c0_16] : memref<64x512xf32, #tpu.memory_space<vmem>>, vector<64x512xf32>
    tpu.vector_store %arg13[%c0_15, %c0_16], %33 {strides = array<i32>} : memref<64x512xf32, #tpu.memory_space<vmem>>, vector<64x512xf32>,
    %cst_17 = arith.constant 0.000000e+00 : f32
    %35 = vector.broadcast %cst_17 : f32 to vector<8x128xf32>
    %cst_18 = arith.constant 0.000000e+00 : f32
    %36 = vector.broadcast %cst_18 : f32 to vector<8x128xf32>
    %c0_19 = arith.constant 0 : index
    %c0_20 = arith.constant 0 : index
    %37 = vector.load %arg13[%c0_19, %c0_20] : memref<64x512xf32, #tpu.memory_space<vmem>>, vector<8x512xf32>
    %38 = arith.truncf %35 : vector<8x128xf32> to vector<8x128xbf16>
    %c0_21 = arith.constant 0 : index
    %c0_22 = arith.constant 0 : index
    %39 = vector.load %arg4[%c0_21, %c0_22] : memref<128x512xbf16, #tpu.memory_space<vmem>>, vector<128x512xbf16>
    %cst_23 = arith.constant dense<0.000000e+00> : vector<8x512xf32>
    %40 = tpu.matmul %38, %39, %cst_23 {dimension_numbers = #tpu.dot_dimension_numbers<[1], [0], [0], [1], [0, 0, 1, 1], [], []>} : vector<8x128xbf16>, vector<128x512xbf16>, vector<8x512xf32> -> vector<8x512xf32>
    %41 = arith.addf %37, %40 : vector<8x512xf32>
    %42 = vector.extract_strided_slice %41 {offsets = [0, 0], sizes = [8, 128], strides = [1, 1]} : vector<8x512xf32> to vector<8x128xf32>
    %cst_24 = arith.constant 5.000000e-01 : f32
    %43 = vector.broadcast %cst_24 : f32 to vector<8x128xf32>
    %44 = arith.mulf %43, %42 : vector<8x128xf32>
    %45 = math.tanh %44 : vector<8x128xf32>
    %cst_25 = arith.constant 5.000000e-01 : f32
    %46 = vector.broadcast %cst_25 : f32 to vector<8x128xf32>
    %47 = arith.mulf %46, %45 : vector<8x128xf32>
    %cst_26 = arith.constant 5.000000e-01 : f32
    %48 = vector.broadcast %cst_26 : f32 to vector<8x128xf32>
    %49 = arith.addf %47, %48 : vector<8x128xf32>
    %50 = vector.extract_strided_slice %41 {offsets = [0, 128], sizes = [8, 128], strides = [1, 1]} : vector<8x512xf32> to vector<8x128xf32>
    %cst_27 = arith.constant 5.000000e-01 : f32
    %51 = vector.broadcast %cst_27 : f32 to vector<8x128xf32>
    %52 = arith.mulf %51, %50 : vector<8x128xf32>
    %53 = math.tanh %52 : vector<8x128xf32>
    %cst_28 = arith.constant 5.000000e-01 : f32
    %54 = vector.broadcast %cst_28 : f32 to vector<8x128xf32>
    %55 = arith.mulf %54, %53 : vector<8x128xf32>
    %cst_29 = arith.constant 5.000000e-01 : f32
    %56 = vector.broadcast %cst_29 : f32 to vector<8x128xf32>
    %57 = arith.addf %55, %56 : vector<8x128xf32>
    %58 = vector.extract_strided_slice %41 {offsets = [0, 256], sizes = [8, 128], strides = [1, 1]} : vector<8x512xf32> to vector<8x128xf32>
    %59 = math.tanh %58 : vector<8x128xf32>
    %60 = vector.extract_strided_slice %41 {offsets = [0, 384], sizes = [8, 128], strides = [1, 1]} : vector<8x512xf32> to vector<8x128xf32>
    %cst_30 = arith.constant 5.000000e-01 : f32
    %61 = vector.broadcast %cst_30 : f32 to vector<8x128xf32>
    %62 = arith.mulf %61, %60 : vector<8x128xf32>
    %63 = math.tanh %62 : vector<8x128xf32>
    %cst_31 = arith.constant 5.000000e-01 : f32
    %64 = vector.broadcast %cst_31 : f32 to vector<8x128xf32>
    %65 = arith.mulf %64, %63 : vector<8x128xf32>
    %cst_32 = arith.constant 5.000000e-01 : f32
    %66 = vector.broadcast %cst_32 : f32 to vector<8x128xf32>
    %67 = arith.addf %65, %66 : vector<8x128xf32>
    %68 = arith.mulf %57, %36 : vector<8x128xf32>
    %69 = arith.mulf %49, %59 : vector<8x128xf32>
    %70 = arith.addf %68, %69 : vector<8x128xf32>
    %71 = math.tanh %70 : vector<8x128xf32>
    %72 = arith.mulf %67, %71 : vector<8x128xf32>
    %c8 = arith.constant 8 : index
    %c0_33 = arith.constant 0 : index
    %73 = vector.load %arg13[%c8, %c0_33] : memref<64x512xf32, #tpu.memory_space<vmem>>, vector<8x512xf32>
    %74 = arith.truncf %72 : vector<8x128xf32> to vector<8x128xbf16>
    %c0_34 = arith.constant 0 : index
    %c0_35 = arith.constant 0 : index
    %75 = vector.load %arg4[%c0_34, %c0_35] : memref<128x512xbf16, #tpu.memory_space<vmem>>, vector<128x512xbf16>
    %cst_36 = arith.constant dense<0.000000e+00> : vector<8x512xf32>
    %76 = tpu.matmul %74, %75, %cst_36 {dimension_numbers = #tpu.dot_dimension_numbers<[1], [0], [0], [1], [0, 0, 1, 1], [], []>} : vector<8x128xbf16>, vector<128x512xbf16>, vector<8x512xf32> -> vector<8x512xf32>
    %77 = arith.addf %73, %76 : vector<8x512xf32>
    %78 = vector.extract_strided_slice %77 {offsets = [0, 0], sizes = [8, 128], strides = [1, 1]} : vector<8x512xf32> to vector<8x128xf32>
    %cst_37 = arith.constant 5.000000e-01 : f32
    %79 = vector.broadcast %cst_37 : f32 to vector<8x128xf32>
    %80 = arith.mulf %79, %78 : vector<8x128xf32>
    %81 = math.tanh %80 : vector<8x128xf32>
    %cst_38 = arith.constant 5.000000e-01 : f32
    %82 = vector.broadcast %cst_38 : f32 to vector<8x128xf32>
    %83 = arith.mulf %82, %81 : vector<8x128xf32>
    %cst_39 = arith.constant 5.000000e-01 : f32
    %84 = vector.broadcast %cst_39 : f32 to vector<8x128xf32>
    %85 = arith.addf %83, %84 : vector<8x128xf32>
    %86 = vector.extract_strided_slice %77 {offsets = [0, 128], sizes = [8, 128], strides = [1, 1]} : vector<8x512xf32> to vector<8x128xf32>
    %cst_40 = arith.constant 5.000000e-01 : f32
    %87 = vector.broadcast %cst_40 : f32 to vector<8x128xf32>
    %88 = arith.mulf %87, %86 : vector<8x128xf32>
    %89 = math.tanh %88 : vector<8x128xf32>
    %cst_41 = arith.constant 5.000000e-01 : f32
    %90 = vector.broadcast %cst_41 : f32 to vector<8x128xf32>
    %91 = arith.mulf %90, %89 : vector<8x128xf32>
    %cst_42 = arith.constant 5.000000e-01 : f32
    %92 = vector.broadcast %cst_42 : f32 to vector<8x128xf32>
    %93 = arith.addf %91, %92 : vector<8x128xf32>
    %94 = vector.extract_strided_slice %77 {offsets = [0, 256], sizes = [8, 128], strides = [1, 1]} : vector<8x512xf32> to vector<8x128xf32>
    %95 = math.tanh %94 : vector<8x128xf32>
    %96 = vector.extract_strided_slice %77 {offsets = [0, 384], sizes = [8, 128], strides = [1, 1]} : vector<8x512xf32> to vector<8x128xf32>
    %cst_43 = arith.constant 5.000000e-01 : f32
    %97 = vector.broadcast %cst_43 : f32 to vector<8x128xf32>
    %98 = arith.mulf %97, %96 : vector<8x128xf32>
    %99 = math.tanh %98 : vector<8x128xf32>
    %cst_44 = arith.constant 5.000000e-01 : f32
    %100 = vector.broadcast %cst_44 : f32 to vector<8x128xf32>
    %101 = arith.mulf %100, %99 : vector<8x128xf32>
    %cst_45 = arith.constant 5.000000e-01 : f32
    %102 = vector.broadcast %cst_45 : f32 to vector<8x128xf32>
    %103 = arith.addf %101, %102 : vector<8x128xf32>
    %104 = arith.mulf %93, %70 : vector<8x128xf32>
    %105 = arith.mulf %85, %95 : vector<8x128xf32>
    %106 = arith.addf %104, %105 : vector<8x128xf32>
    %107 = math.tanh %106 : vector<8x128xf32>
    %108 = arith.mulf %103, %107 : vector<8x128xf32>
    %c16 = arith.constant 16 : index
    %c0_46 = arith.constant 0 : index
    %109 = vector.load %arg13[%c16, %c0_46] : memref<64x512xf32, #tpu.memory_space<vmem>>, vector<8x512xf32>
    %110 = arith.truncf %108 : vector<8x128xf32> to vector<8x128xbf16>
    %c0_47 = arith.constant 0 : index
    %c0_48 = arith.constant 0 : index
    %111 = vector.load %arg4[%c0_47, %c0_48] : memref<128x512xbf16, #tpu.memory_space<vmem>>, vector<128x512xbf16>
    %cst_49 = arith.constant dense<0.000000e+00> : vector<8x512xf32>
    %112 = tpu.matmul %110, %111, %cst_49 {dimension_numbers = #tpu.dot_dimension_numbers<[1], [0], [0], [1], [0, 0, 1, 1], [], []>} : vector<8x128xbf16>, vector<128x512xbf16>, vector<8x512xf32> -> vector<8x512xf32>
    %113 = arith.addf %109, %112 : vector<8x512xf32>
    %114 = vector.extract_strided_slice %113 {offsets = [0, 0], sizes = [8, 128], strides = [1, 1]} : vector<8x512xf32> to vector<8x128xf32>
    %cst_50 = arith.constant 5.000000e-01 : f32
    %115 = vector.broadcast %cst_50 : f32 to vector<8x128xf32>
    %116 = arith.mulf %115, %114 : vector<8x128xf32>
    %117 = math.tanh %116 : vector<8x128xf32>
    %cst_51 = arith.constant 5.000000e-01 : f32
    %118 = vector.broadcast %cst_51 : f32 to vector<8x128xf32>
    %119 = arith.mulf %118, %117 : vector<8x128xf32>
    %cst_52 = arith.constant 5.000000e-01 : f32
    %120 = vector.broadcast %cst_52 : f32 to vector<8x128xf32>
    %121 = arith.addf %119, %120 : vector<8x128xf32>
    %122 = vector.extract_strided_slice %113 {offsets = [0, 128], sizes = [8, 128], strides = [1, 1]} : vector<8x512xf32> to vector<8x128xf32>
    %cst_53 = arith.constant 5.000000e-01 : f32
    %123 = vector.broadcast %cst_53 : f32 to vector<8x128xf32>
    %124 = arith.mulf %123, %122 : vector<8x128xf32>
    %125 = math.tanh %124 : vector<8x128xf32>
    %cst_54 = arith.constant 5.000000e-01 : f32
    %126 = vector.broadcast %cst_54 : f32 to vector<8x128xf32>
    %127 = arith.mulf %126, %125 : vector<8x128xf32>
    %cst_55 = arith.constant 5.000000e-01 : f32
    %128 = vector.broadcast %cst_55 : f32 to vector<8x128xf32>
    %129 = arith.addf %127, %128 : vector<8x128xf32>
    %130 = vector.extract_strided_slice %113 {offsets = [0, 256], sizes = [8, 128], strides = [1, 1]} : vector<8x512xf32> to vector<8x128xf32>
    %131 = math.tanh %130 : vector<8x128xf32>
    %132 = vector.extract_strided_slice %113 {offsets = [0, 384], sizes = [8, 128], strides = [1, 1]} : vector<8x512xf32> to vector<8x128xf32>
    %cst_56 = arith.constant 5.000000e-01 : f32
    %133 = vector.broadcast %cst_56 : f32 to vector<8x128xf32>
    %134 = arith.mulf %133, %132 : vector<8x128xf32>
    %135 = math.tanh %134 : vector<8x128xf32>
    %cst_57 = arith.constant 5.000000e-01 : f32
    %136 = vector.broadcast %cst_57 : f32 to vector<8x128xf32>
    %137 = arith.mulf %136, %135 : vector<8x128xf32>
    %cst_58 = arith.constant 5.000000e-01 : f32
    %138 = vector.broadcast %cst_58 : f32 to vector<8x128xf32>
    %139 = arith.addf %137, %138 : vector<8x128xf32>
    %140 = arith.mulf %129, %106 : vector<8x128xf32>
    %141 = arith.mulf %121, %131 : vector<8x128xf32>
    %142 = arith.addf %140, %141 : vector<8x128xf32>
    %143 = math.tanh %142 : vector<8x128xf32>
    %144 = arith.mulf %139, %143 : vector<8x128xf32>
    %c24 = arith.constant 24 : index
    %c0_59 = arith.constant 0 : index
    %145 = vector.load %arg13[%c24, %c0_59] : memref<64x512xf32, #tpu.memory_space<vmem>>, vector<8x512xf32>
    %146 = arith.truncf %144 : vector<8x128xf32> to vector<8x128xbf16>
    %c0_60 = arith.constant 0 : index
    %c0_61 = arith.constant 0 : index
    %147 = vector.load %arg4[%c0_60, %c0_61] : memref<128x512xbf16, #tpu.memory_space<vmem>>, vector<128x512xbf16>
    %cst_62 = arith.constant dense<0.000000e+00> : vector<8x512xf32>
    %148 = tpu.matmul %146, %147, %cst_62 {dimension_numbers = #tpu.dot_dimension_numbers<[1], [0], [0], [1], [0, 0, 1, 1], [], []>} : vector<8x128xbf16>, vector<128x512xbf16>, vector<8x512xf32> -> vector<8x512xf32>
    %149 = arith.addf %145, %148 : vector<8x512xf32>
    %150 = vector.extract_strided_slice %149 {offsets = [0, 0], sizes = [8, 128], strides = [1, 1]} : vector<8x512xf32> to vector<8x128xf32>
    %cst_63 = arith.constant 5.000000e-01 : f32
    %151 = vector.broadcast %cst_63 : f32 to vector<8x128xf32>
    %152 = arith.mulf %151, %150 : vector<8x128xf32>
    %153 = math.tanh %152 : vector<8x128xf32>
    %cst_64 = arith.constant 5.000000e-01 : f32
    %154 = vector.broadcast %cst_64 : f32 to vector<8x128xf32>
    %155 = arith.mulf %154, %153 : vector<8x128xf32>
    %cst_65 = arith.constant 5.000000e-01 : f32
    %156 = vector.broadcast %cst_65 : f32 to vector<8x128xf32>
    %157 = arith.addf %155, %156 : vector<8x128xf32>
    %158 = vector.extract_strided_slice %149 {offsets = [0, 128], sizes = [8, 128], strides = [1, 1]} : vector<8x512xf32> to vector<8x128xf32>
    %cst_66 = arith.constant 5.000000e-01 : f32
    %159 = vector.broadcast %cst_66 : f32 to vector<8x128xf32>
    %160 = arith.mulf %159, %158 : vector<8x128xf32>
    %161 = math.tanh %160 : vector<8x128xf32>
    %cst_67 = arith.constant 5.000000e-01 : f32
    %162 = vector.broadcast %cst_67 : f32 to vector<8x128xf32>
    %163 = arith.mulf %162, %161 : vector<8x128xf32>
    %cst_68 = arith.constant 5.000000e-01 : f32
    %164 = vector.broadcast %cst_68 : f32 to vector<8x128xf32>
    %165 = arith.addf %163, %164 : vector<8x128xf32>
    %166 = vector.extract_strided_slice %149 {offsets = [0, 256], sizes = [8, 128], strides = [1, 1]} : vector<8x512xf32> to vector<8x128xf32>
    %167 = math.tanh %166 : vector<8x128xf32>
    %168 = vector.extract_strided_slice %149 {offsets = [0, 384], sizes = [8, 128], strides = [1, 1]} : vector<8x512xf32> to vector<8x128xf32>
    %cst_69 = arith.constant 5.000000e-01 : f32
    %169 = vector.broadcast %cst_69 : f32 to vector<8x128xf32>
    %170 = arith.mulf %169, %168 : vector<8x128xf32>
    %171 = math.tanh %170 : vector<8x128xf32>
    %cst_70 = arith.constant 5.000000e-01 : f32
    %172 = vector.broadcast %cst_70 : f32 to vector<8x128xf32>
    %173 = arith.mulf %172, %171 : vector<8x128xf32>
    %cst_71 = arith.constant 5.000000e-01 : f32
    %174 = vector.broadcast %cst_71 : f32 to vector<8x128xf32>
    %175 = arith.addf %173, %174 : vector<8x128xf32>
    %176 = arith.mulf %165, %142 : vector<8x128xf32>
    %177 = arith.mulf %157, %167 : vector<8x128xf32>
    %178 = arith.addf %176, %177 : vector<8x128xf32>
    %179 = math.tanh %178 : vector<8x128xf32>
    %180 = arith.mulf %175, %179 : vector<8x128xf32>
    %c32 = arith.constant 32 : index
    %c0_72 = arith.constant 0 : index
    %181 = vector.load %arg13[%c32, %c0_72] : memref<64x512xf32, #tpu.memory_space<vmem>>, vector<8x512xf32>
    %182 = arith.truncf %180 : vector<8x128xf32> to vector<8x128xbf16>
    %c0_73 = arith.constant 0 : index
    %c0_74 = arith.constant 0 : index
    %183 = vector.load %arg4[%c0_73, %c0_74] : memref<128x512xbf16, #tpu.memory_space<vmem>>, vector<128x512xbf16>
    %cst_75 = arith.constant dense<0.000000e+00> : vector<8x512xf32>
    %184 = tpu.matmul %182, %183, %cst_75 {dimension_numbers = #tpu.dot_dimension_numbers<[1], [0], [0], [1], [0, 0, 1, 1], [], []>} : vector<8x128xbf16>, vector<128x512xbf16>, vector<8x512xf32> -> vector<8x512xf32>
    %185 = arith.addf %181, %184 : vector<8x512xf32>
    %186 = vector.extract_strided_slice %185 {offsets = [0, 0], sizes = [8, 128], strides = [1, 1]} : vector<8x512xf32> to vector<8x128xf32>
    %cst_76 = arith.constant 5.000000e-01 : f32
    %187 = vector.broadcast %cst_76 : f32 to vector<8x128xf32>
    %188 = arith.mulf %187, %186 : vector<8x128xf32>
    %189 = math.tanh %188 : vector<8x128xf32>
    %cst_77 = arith.constant 5.000000e-01 : f32
    %190 = vector.broadcast %cst_77 : f32 to vector<8x128xf32>
    %191 = arith.mulf %190, %189 : vector<8x128xf32>
    %cst_78 = arith.constant 5.000000e-01 : f32
    %192 = vector.broadcast %cst_78 : f32 to vector<8x128xf32>
    %193 = arith.addf %191, %192 : vector<8x128xf32>
    %194 = vector.extract_strided_slice %185 {offsets = [0, 128], sizes = [8, 128], strides = [1, 1]} : vector<8x512xf32> to vector<8x128xf32>
    %cst_79 = arith.constant 5.000000e-01 : f32
    %195 = vector.broadcast %cst_79 : f32 to vector<8x128xf32>
    %196 = arith.mulf %195, %194 : vector<8x128xf32>
    %197 = math.tanh %196 : vector<8x128xf32>
    %cst_80 = arith.constant 5.000000e-01 : f32
    %198 = vector.broadcast %cst_80 : f32 to vector<8x128xf32>
    %199 = arith.mulf %198, %197 : vector<8x128xf32>
    %cst_81 = arith.constant 5.000000e-01 : f32
    %200 = vector.broadcast %cst_81 : f32 to vector<8x128xf32>
    %201 = arith.addf %199, %200 : vector<8x128xf32>
    %202 = vector.extract_strided_slice %185 {offsets = [0, 256], sizes = [8, 128], strides = [1, 1]} : vector<8x512xf32> to vector<8x128xf32>
    %203 = math.tanh %202 : vector<8x128xf32>
    %204 = vector.extract_strided_slice %185 {offsets = [0, 384], sizes = [8, 128], strides = [1, 1]} : vector<8x512xf32> to vector<8x128xf32>
    %cst_82 = arith.constant 5.000000e-01 : f32
    %205 = vector.broadcast %cst_82 : f32 to vector<8x128xf32>
    %206 = arith.mulf %205, %204 : vector<8x128xf32>
    %207 = math.tanh %206 : vector<8x128xf32>
    %cst_83 = arith.constant 5.000000e-01 : f32
    %208 = vector.broadcast %cst_83 : f32 to vector<8x128xf32>
    %209 = arith.mulf %208, %207 : vector<8x128xf32>
    %cst_84 = arith.constant 5.000000e-01 : f32
    %210 = vector.broadcast %cst_84 : f32 to vector<8x128xf32>
    %211 = arith.addf %209, %210 : vector<8x128xf32>
    %212 = arith.mulf %201, %178 : vector<8x128xf32>
    %213 = arith.mulf %193, %203 : vector<8x128xf32>
    %214 = arith.addf %212, %213 : vector<8x128xf32>
    %215 = math.tanh %214 : vector<8x128xf32>
    %216 = arith.mulf %211, %215 : vector<8x128xf32>
    %c40 = arith.constant 40 : index
    %c0_85 = arith.constant 0 : index
    %217 = vector.load %arg13[%c40, %c0_85] : memref<64x512xf32, #tpu.memory_space<vmem>>, vector<8x512xf32>
    %218 = arith.truncf %216 : vector<8x128xf32> to vector<8x128xbf16>
    %c0_86 = arith.constant 0 : index
    %c0_87 = arith.constant 0 : index
    %219 = vector.load %arg4[%c0_86, %c0_87] : memref<128x512xbf16, #tpu.memory_space<vmem>>, vector<128x512xbf16>
    %cst_88 = arith.constant dense<0.000000e+00> : vector<8x512xf32>
    %220 = tpu.matmul %218, %219, %cst_88 {dimension_numbers = #tpu.dot_dimension_numbers<[1], [0], [0], [1], [0, 0, 1, 1], [], []>} : vector<8x128xbf16>, vector<128x512xbf16>, vector<8x512xf32> -> vector<8x512xf32>
    %221 = arith.addf %217, %220 : vector<8x512xf32>
    %222 = vector.extract_strided_slice %221 {offsets = [0, 0], sizes = [8, 128], strides = [1, 1]} : vector<8x512xf32> to vector<8x128xf32>
    %cst_89 = arith.constant 5.000000e-01 : f32
    %223 = vector.broadcast %cst_89 : f32 to vector<8x128xf32>
    %224 = arith.mulf %223, %222 : vector<8x128xf32>
    %225 = math.tanh %224 : vector<8x128xf32>
    %cst_90 = arith.constant 5.000000e-01 : f32
    %226 = vector.broadcast %cst_90 : f32 to vector<8x128xf32>
    %227 = arith.mulf %226, %225 : vector<8x128xf32>
    %cst_91 = arith.constant 5.000000e-01 : f32
    %228 = vector.broadcast %cst_91 : f32 to vector<8x128xf32>
    %229 = arith.addf %227, %228 : vector<8x128xf32>
    %230 = vector.extract_strided_slice %221 {offsets = [0, 128], sizes = [8, 128], strides = [1, 1]} : vector<8x512xf32> to vector<8x128xf32>
    %cst_92 = arith.constant 5.000000e-01 : f32
    %231 = vector.broadcast %cst_92 : f32 to vector<8x128xf32>
    %232 = arith.mulf %231, %230 : vector<8x128xf32>
    %233 = math.tanh %232 : vector<8x128xf32>
    %cst_93 = arith.constant 5.000000e-01 : f32
    %234 = vector.broadcast %cst_93 : f32 to vector<8x128xf32>
    %235 = arith.mulf %234, %233 : vector<8x128xf32>
    %cst_94 = arith.constant 5.000000e-01 : f32
    %236 = vector.broadcast %cst_94 : f32 to vector<8x128xf32>
    %237 = arith.addf %235, %236 : vector<8x128xf32>
    %238 = vector.extract_strided_slice %221 {offsets = [0, 256], sizes = [8, 128], strides = [1, 1]} : vector<8x512xf32> to vector<8x128xf32>
    %239 = math.tanh %238 : vector<8x128xf32>
    %240 = vector.extract_strided_slice %221 {offsets = [0, 384], sizes = [8, 128], strides = [1, 1]} : vector<8x512xf32> to vector<8x128xf32>
    %cst_95 = arith.constant 5.000000e-01 : f32
    %241 = vector.broadcast %cst_95 : f32 to vector<8x128xf32>
    %242 = arith.mulf %241, %240 : vector<8x128xf32>
    %243 = math.tanh %242 : vector<8x128xf32>
    %cst_96 = arith.constant 5.000000e-01 : f32
    %244 = vector.broadcast %cst_96 : f32 to vector<8x128xf32>
    %245 = arith.mulf %244, %243 : vector<8x128xf32>
    %cst_97 = arith.constant 5.000000e-01 : f32
    %246 = vector.broadcast %cst_97 : f32 to vector<8x128xf32>
    %247 = arith.addf %245, %246 : vector<8x128xf32>
    %248 = arith.mulf %237, %214 : vector<8x128xf32>
    %249 = arith.mulf %229, %239 : vector<8x128xf32>
    %250 = arith.addf %248, %249 : vector<8x128xf32>
    %251 = math.tanh %250 : vector<8x128xf32>
    %252 = arith.mulf %247, %251 : vector<8x128xf32>
    %c48 = arith.constant 48 : index
    %c0_98 = arith.constant 0 : index
    %253 = vector.load %arg13[%c48, %c0_98] : memref<64x512xf32, #tpu.memory_space<vmem>>, vector<8x512xf32>
    %254 = arith.truncf %252 : vector<8x128xf32> to vector<8x128xbf16>
    %c0_99 = arith.constant 0 : index
    %c0_100 = arith.constant 0 : index
    %255 = vector.load %arg4[%c0_99, %c0_100] : memref<128x512xbf16, #tpu.memory_space<vmem>>, vector<128x512xbf16>
    %cst_101 = arith.constant dense<0.000000e+00> : vector<8x512xf32>
    %256 = tpu.matmul %254, %255, %cst_101 {dimension_numbers = #tpu.dot_dimension_numbers<[1], [0], [0], [1], [0, 0, 1, 1], [], []>} : vector<8x128xbf16>, vector<128x512xbf16>, vector<8x512xf32> -> vector<8x512xf32>
    %257 = arith.addf %253, %256 : vector<8x512xf32>
    %258 = vector.extract_strided_slice %257 {offsets = [0, 0], sizes = [8, 128], strides = [1, 1]} : vector<8x512xf32> to vector<8x128xf32>
    %cst_102 = arith.constant 5.000000e-01 : f32
    %259 = vector.broadcast %cst_102 : f32 to vector<8x128xf32>
    %260 = arith.mulf %259, %258 : vector<8x128xf32>
    %261 = math.tanh %260 : vector<8x128xf32>
    %cst_103 = arith.constant 5.000000e-01 : f32
    %262 = vector.broadcast %cst_103 : f32 to vector<8x128xf32>
    %263 = arith.mulf %262, %261 : vector<8x128xf32>
    %cst_104 = arith.constant 5.000000e-01 : f32
    %264 = vector.broadcast %cst_104 : f32 to vector<8x128xf32>
    %265 = arith.addf %263, %264 : vector<8x128xf32>
    %266 = vector.extract_strided_slice %257 {offsets = [0, 128], sizes = [8, 128], strides = [1, 1]} : vector<8x512xf32> to vector<8x128xf32>
    %cst_105 = arith.constant 5.000000e-01 : f32
    %267 = vector.broadcast %cst_105 : f32 to vector<8x128xf32>
    %268 = arith.mulf %267, %266 : vector<8x128xf32>
    %269 = math.tanh %268 : vector<8x128xf32>
    %cst_106 = arith.constant 5.000000e-01 : f32
    %270 = vector.broadcast %cst_106 : f32 to vector<8x128xf32>
    %271 = arith.mulf %270, %269 : vector<8x128xf32>
    %cst_107 = arith.constant 5.000000e-01 : f32
    %272 = vector.broadcast %cst_107 : f32 to vector<8x128xf32>
    %273 = arith.addf %271, %272 : vector<8x128xf32>
    %274 = vector.extract_strided_slice %257 {offsets = [0, 256], sizes = [8, 128], strides = [1, 1]} : vector<8x512xf32> to vector<8x128xf32>
    %275 = math.tanh %274 : vector<8x128xf32>
    %276 = vector.extract_strided_slice %257 {offsets = [0, 384], sizes = [8, 128], strides = [1, 1]} : vector<8x512xf32> to vector<8x128xf32>
    %cst_108 = arith.constant 5.000000e-01 : f32
    %277 = vector.broadcast %cst_108 : f32 to vector<8x128xf32>
    %278 = arith.mulf %277, %276 : vector<8x128xf32>
    %279 = math.tanh %278 : vector<8x128xf32>
    %cst_109 = arith.constant 5.000000e-01 : f32
    %280 = vector.broadcast %cst_109 : f32 to vector<8x128xf32>
    %281 = arith.mulf %280, %279 : vector<8x128xf32>
    %cst_110 = arith.constant 5.000000e-01 : f32
    %282 = vector.broadcast %cst_110 : f32 to vector<8x128xf32>
    %283 = arith.addf %281, %282 : vector<8x128xf32>
    %284 = arith.mulf %273, %250 : vector<8x128xf32>
    %285 = arith.mulf %265, %275 : vector<8x128xf32>
    %286 = arith.addf %284, %285 : vector<8x128xf32>
    %287 = math.tanh %286 : vector<8x128xf32>
    %288 = arith.mulf %283, %287 : vector<8x128xf32>
    %c56 = arith.constant 56 : index
    %c0_111 = arith.constant 0 : index
    %289 = vector.load %arg13[%c56, %c0_111] : memref<64x512xf32, #tpu.memory_space<vmem>>, vector<8x512xf32>
    %290 = arith.truncf %288 : vector<8x128xf32> to vector<8x128xbf16>
    %c0_112 = arith.constant 0 : index
    %c0_113 = arith.constant 0 : index
    %291 = vector.load %arg4[%c0_112, %c0_113] : memref<128x512xbf16, #tpu.memory_space<vmem>>, vector<128x512xbf16>
    %cst_114 = arith.constant dense<0.000000e+00> : vector<8x512xf32>
    %292 = tpu.matmul %290, %291, %cst_114 {dimension_numbers = #tpu.dot_dimension_numbers<[1], [0], [0], [1], [0, 0, 1, 1], [], []>} : vector<8x128xbf16>, vector<128x512xbf16>, vector<8x512xf32> -> vector<8x512xf32>
    %293 = arith.addf %289, %292 : vector<8x512xf32>
    %294 = vector.extract_strided_slice %293 {offsets = [0, 0], sizes = [8, 128], strides = [1, 1]} : vector<8x512xf32> to vector<8x128xf32>
    %cst_115 = arith.constant 5.000000e-01 : f32
    %295 = vector.broadcast %cst_115 : f32 to vector<8x128xf32>
    %296 = arith.mulf %295, %294 : vector<8x128xf32>
    %297 = math.tanh %296 : vector<8x128xf32>
    %cst_116 = arith.constant 5.000000e-01 : f32
    %298 = vector.broadcast %cst_116 : f32 to vector<8x128xf32>
    %299 = arith.mulf %298, %297 : vector<8x128xf32>
    %cst_117 = arith.constant 5.000000e-01 : f32
    %300 = vector.broadcast %cst_117 : f32 to vector<8x128xf32>
    %301 = arith.addf %299, %300 : vector<8x128xf32>
    %302 = vector.extract_strided_slice %293 {offsets = [0, 128], sizes = [8, 128], strides = [1, 1]} : vector<8x512xf32> to vector<8x128xf32>
    %cst_118 = arith.constant 5.000000e-01 : f32
    %303 = vector.broadcast %cst_118 : f32 to vector<8x128xf32>
    %304 = arith.mulf %303, %302 : vector<8x128xf32>
    %305 = math.tanh %304 : vector<8x128xf32>
    %cst_119 = arith.constant 5.000000e-01 : f32
    %306 = vector.broadcast %cst_119 : f32 to vector<8x128xf32>
    %307 = arith.mulf %306, %305 : vector<8x128xf32>
    %cst_120 = arith.constant 5.000000e-01 : f32
    %308 = vector.broadcast %cst_120 : f32 to vector<8x128xf32>
    %309 = arith.addf %307, %308 : vector<8x128xf32>
    %310 = vector.extract_strided_slice %293 {offsets = [0, 256], sizes = [8, 128], strides = [1, 1]} : vector<8x512xf32> to vector<8x128xf32>
    %311 = math.tanh %310 : vector<8x128xf32>
    %312 = vector.extract_strided_slice %293 {offsets = [0, 384], sizes = [8, 128], strides = [1, 1]} : vector<8x512xf32> to vector<8x128xf32>
    %cst_121 = arith.constant 5.000000e-01 : f32
    %313 = vector.broadcast %cst_121 : f32 to vector<8x128xf32>
    %314 = arith.mulf %313, %312 : vector<8x128xf32>
    %315 = math.tanh %314 : vector<8x128xf32>
    %cst_122 = arith.constant 5.000000e-01 : f32
    %316 = vector.broadcast %cst_122 : f32 to vector<8x128xf32>
    %317 = arith.mulf %316, %315 : vector<8x128xf32>
    %cst_123 = arith.constant 5.000000e-01 : f32
    %318 = vector.broadcast %cst_123 : f32 to vector<8x128xf32>
    %319 = arith.addf %317, %318 : vector<8x128xf32>
    %320 = arith.mulf %309, %286 : vector<8x128xf32>
    %321 = arith.mulf %301, %311 : vector<8x128xf32>
    %322 = arith.addf %320, %321 : vector<8x128xf32>
    %323 = math.tanh %322 : vector<8x128xf32>
    %324 = arith.mulf %319, %323 : vector<8x128xf32>
    %325 = arith.truncf %324 : vector<8x128xf32> to vector<8x128xbf16>
    %c0_124 = arith.constant 0 : index
    %c0_125 = arith.constant 0 : index
    %326 = vector.load %arg6[%c0_124, %c0_125] : memref<128x128xbf16, #tpu.memory_space<vmem>>, vector<128x128xbf16>
    %cst_126 = arith.constant dense<0.000000e+00> : vector<8x128xf32>
    %327 = tpu.matmul %325, %326, %cst_126 {dimension_numbers = #tpu.dot_dimension_numbers<[1], [0], [0], [1], [0, 0, 1, 1], [], []>} : vector<8x128xbf16>, vector<128x128xbf16>, vector<8x128xf32> -> vector<8x128xf32>
    %c0_127 = arith.constant 0 : index
    %c0_128 = arith.constant 0 : index
    %328 = vector.load %arg7[%c0_127, %c0_128] : memref<1x128xf32, #tpu.memory_space<vmem>>, vector<1x128xf32>
    %329 = vector.broadcast %328 : vector<1x128xf32> to vector<8x128xf32>
    %330 = arith.addf %327, %329 : vector<8x128xf32>
    %cst_129 = arith.constant 0.000000e+00 : f32
    %331 = vector.broadcast %cst_129 : f32 to vector<8x128xf32>
    %332 = arith.maximumf %330, %331 : vector<8x128xf32>
    %333 = arith.truncf %332 : vector<8x128xf32> to vector<8x128xbf16>
    %c0_130 = arith.constant 0 : index
    %c0_131 = arith.constant 0 : index
    %334 = vector.load %arg8[%c0_130, %c0_131] : memref<128x128xbf16, #tpu.memory_space<vmem>>, vector<128x128xbf16>
    %cst_132 = arith.constant dense<0.000000e+00> : vector<8x128xf32>
    %335 = tpu.matmul %333, %334, %cst_132 {dimension_numbers = #tpu.dot_dimension_numbers<[1], [0], [0], [1], [0, 0, 1, 1], [], []>} : vector<8x128xbf16>, vector<128x128xbf16>, vector<8x128xf32> -> vector<8x128xf32>
    %c0_133 = arith.constant 0 : index
    %c0_134 = arith.constant 0 : index
    %336 = vector.load %arg9[%c0_133, %c0_134] : memref<1x128xf32, #tpu.memory_space<vmem>>, vector<1x128xf32>
    %337 = vector.broadcast %336 : vector<1x128xf32> to vector<8x128xf32>
    %338 = arith.addf %335, %337 : vector<8x128xf32>
    %cst_135 = arith.constant 0.000000e+00 : f32
    %339 = vector.broadcast %cst_135 : f32 to vector<8x128xf32>
    %340 = arith.maximumf %338, %339 : vector<8x128xf32>
    %341 = arith.truncf %340 : vector<8x128xf32> to vector<8x128xbf16>
    %c0_136 = arith.constant 0 : index
    %c0_137 = arith.constant 0 : index
    %342 = vector.load %arg10[%c0_136, %c0_137] : memref<128x128xbf16, #tpu.memory_space<vmem>>, vector<128x128xbf16>
    %cst_138 = arith.constant dense<0.000000e+00> : vector<8x128xf32>
    %343 = tpu.matmul %341, %342, %cst_138 {dimension_numbers = #tpu.dot_dimension_numbers<[1], [0], [0], [1], [0, 0, 1, 1], [], []>} : vector<8x128xbf16>, vector<128x128xbf16>, vector<8x128xf32> -> vector<8x128xf32>
    %c0_139 = arith.constant 0 : index
    %c0_140 = arith.constant 0 : index
    %344 = vector.load %arg11[%c0_139, %c0_140] : memref<1x128xf32, #tpu.memory_space<vmem>>, vector<1x128xf32>
    %345 = vector.broadcast %344 : vector<1x128xf32> to vector<8x128xf32>
    %346 = arith.addf %343, %345 : vector<8x128xf32>
    %c0_141 = arith.constant 0 : index
    %c0_142 = arith.constant 0 : index
    %347 = vector.load %arg12[%c0_141, %c0_142] : memref<8x128xf32, #tpu.memory_space<vmem>>, vector<8x128xf32>
    tpu.vector_store %arg12[%c0_141, %c0_142], %346 {strides = array<i32>} : memref<8x128xf32, #tpu.memory_space<vmem>>, vector<8x128xf32>,
    return
  }
}

</mosaic_0001>

<bundles_post_ra>
// kernel: tpu_custom_call.1
= control target key start
LH: loop header
LB: loop body
LE: loop exit
PB: predicated region body
PF: predicated region fallthrough
CT: control target
= control target key end

     0   :  { %17 = vsyncpa [#allocation4], 0  ;;  %s3245_s0 = inlined_call_operand.hbm [shape: f32[8,8,24], index: 0, kind: input, shape index: {}]   ;;  %s3246_s1 = inlined_call_operand.vmem [shape: f32[1,24], index: 1, kind: input, shape index: {}]   ;;  %s3247_s2 = inlined_call_operand.vmem [shape: f32[1,24], index: 2, kind: input, shape index: {}]   ;;  %s3248_s3 = inlined_call_operand.hbm [shape: bf16[24,512], index: 3, kind: input, shape index: {}]   ;;  %s3249_s4 = inlined_call_operand.hbm [shape: bf16[128,512], index: 4, kind: input, shape index: {}]   ;;  %s3250_s5 = inlined_call_operand.vmem [shape: f32[1,512], index: 5, kind: input, shape index: {}]   ;;  %s3251_s6 = inlined_call_operand.hbm [shape: bf16[128,128], index: 6, kind: input, shape index: {}]   ;;  %s3252_s7 = inlined_call_operand.vmem [shape: f32[1,128], index: 7, kind: input, shape index: {}]   ;;  %s3253_s8 = inlined_call_operand.hbm [shape: bf16[128,128], index: 8, kind: input, shape index: {}]   ;;  %s3254_s9 = inlined_call_operand.vmem [shape: f32[1,128], index: 9, kind: input, shape index: {}]   ;;  %s3255_s10 = inlined_call_operand.hbm [shape: bf16[128,128], index: 10, kind: input, shape index: {}]   ;;  %s3256_s11 = inlined_call_operand.vmem [shape: f32[1,128], index: 11, kind: input, shape index: {}]   ;;  %s3257_s12 = inlined_call_operand.hbm [shape: f32[8,128], index: 12, kind: output, shape index: {}]  }
   0x1   :  { %18 = vsyncpa [#allocation7], 0 }
   0x2   :  { %19 = vsyncpa [#allocation10], 0 }
   0x3   :  { %20 = vsyncpa [#allocation13], 0 }
   0x4   :  { %21 = vsyncpa [#allocation5], 0  ;;  %s2496_s21 = smov [#allocation6]  }
   0x5   :  { %s43_s22 = sshll.u32 %s2496_s21, 4  ;;  %s44_s22 = int_to_ptr.vmem [resolvable:$true] %s43_s22 }
   0x6   :  { %s2354_s23 = scalar_lea.vmem %s44_s22, 768  ;;  %p2359_p1 = scmp.lt.s32.totalorder %s44_s22, %s44_s22 }
   0x7   :  { %p2355_p0 = scmp.ne.s32.totalorder %s44_s22, %s2354_s23  ;;  %p2360_p2 = scmp.lt.s32.totalorder %s2354_s23, %s2354_s23 }
   0x9   :  { %p2361_p3 = por %p2360_p2, %p2359_p1 }
   0xb   :  { %p2362_p4 = pnand %p2361_p3, %p2355_p0 }
   0xd   :  { %2365 = shalt.err (!%p2362_p4)
}
   0xe   :  { %s2497_s24 = smov 256   ;;  %s2498_s25 = smov 16  }
   0xf   :  { %49 = dma.hbm_to_vmem [thread:$0]  %s3248_s3, 768, %s44_s22, [#allocation7], %s2497_s24, %s2497_s24, %s2498_s25  }
  0x10   :  { %s2499_s28 = smov [#allocation9]  }
  0x11   :  { %s69_s29 = sshll.u32 %s2499_s28, 4  ;;  %s70_s29 = int_to_ptr.vmem [resolvable:$true] %s69_s29 }
  0x12   :  { %s2374_s30 = scalar_lea.vmem %s70_s29, 1024  ;;  %p2379_p6 = scmp.lt.s32.totalorder %s70_s29, %s70_s29 }
  0x13   :  { %p2375_p5 = scmp.ne.s32.totalorder %s70_s29, %s2374_s30  ;;  %p2380_p7 = scmp.lt.s32.totalorder %s2374_s30, %s2374_s30 }
  0x15   :  { %p2381_p8 = por %p2380_p7, %p2379_p6 }
  0x17   :  { %p2382_p9 = pnand %p2381_p8, %p2375_p5 }
  0x19   :  { %2385 = shalt.err (!%p2382_p9)
}
  0x1a   :  { %s2500_s13 = smov 64   ;;  %s2501_s14 = smov 4  }
  0x1b   :  { %75 = dma.hbm_to_vmem [thread:$0]  %s3251_s6, 1024, %s70_s29, [#allocation10], %s2500_s13, %s2500_s13, %s2501_s14  }
  0x1c   :  { %s2502_s3 = smov [#allocation3]  }
  0x1d   :  { %s27_s17 = sshll.u32 %s2502_s3, 4  ;;  %s28_s17 = int_to_ptr.vmem [resolvable:$true] %s27_s17 }
  0x1e   :  { %s2394_s18 = scalar_lea.vmem %s28_s17, 1024  ;;  %p2399_p11 = scmp.lt.s32.totalorder %s28_s17, %s28_s17 }
  0x1f   :  { %p2395_p10 = scmp.ne.s32.totalorder %s28_s17, %s2394_s18  ;;  %p2400_p12 = scmp.lt.s32.totalorder %s2394_s18, %s2394_s18 }
  0x21   :  { %p2401_p13 = por %p2400_p12, %p2399_p11 }
  0x23   :  { %p2402_p0 = pnand %p2401_p13, %p2395_p10 }
  0x25   :  { %2405 = shalt.err (!%p2402_p0)
}
  0x26   :  { %s2503_s19 = smov 128   ;;  %s2504_s20 = smov 8  }
  0x27   :  { %33 = dma.hbm_to_vmem [thread:$0]  %s3245_s0, 1024, %s28_s17, [#allocation4], %s2503_s19, %s2503_s19, %s2504_s20  }
  0x28   :  { %s2505_s23 = smov [#allocation8]   ;;  %s2506_s6 = smov [#allocation11]  }
  0x29   :  { %s55_s26 = sshll.u32 %s2505_s23, 4  ;;  %s83_s27 = sshll.u32 %s2506_s6, 4  ;;  %s56_s26 = int_to_ptr.vmem [resolvable:$true] %s55_s26  ;;  %s84_s27 = int_to_ptr.vmem [resolvable:$true] %s83_s27 }
  0x2a   :  { %s2414_s28 = scalar_lea.vmem %s56_s26, 4096  ;;  %p2419_p2 = scmp.lt.s32.totalorder %s56_s26, %s56_s26 }
  0x2b   :  { %p2415_p1 = scmp.ne.s32.totalorder %s56_s26, %s2414_s28  ;;  %p2420_p3 = scmp.lt.s32.totalorder %s2414_s28, %s2414_s28 }
  0x2d   :  { %p2421_p4 = por %p2420_p3, %p2419_p2 }
  0x2f   :  { %p2422_p5 = pnand %p2421_p4, %p2415_p1 }
  0x31   :  { %2425 = shalt.err (!%p2422_p5)
}
  0x32   :  { %61 = dma.hbm_to_vmem [thread:$0]  %s3249_s4, 4096, %s56_s26, [#allocation7], %s2497_s24, %s2497_s24, %s2498_s25  }
  0x33   :  { %s2434_s0 = scalar_lea.vmem %s84_s27, 1024  ;;  %p2439_p7 = scmp.lt.s32.totalorder %s84_s27, %s84_s27 }
  0x34   :  { %p2435_p6 = scmp.ne.s32.totalorder %s84_s27, %s2434_s0  ;;  %p2440_p8 = scmp.lt.s32.totalorder %s2434_s0, %s2434_s0 }
  0x36   :  { %p2441_p9 = por %p2440_p8, %p2439_p7 }
  0x38   :  { %p2442_p10 = pnand %p2441_p9, %p2435_p6 }
  0x3a   :  { %2445 = shalt.err (!%p2442_p10)
}
  0x3b   :  { %89 = dma.hbm_to_vmem [thread:$0]  %s3253_s8, 1024, %s84_s27, [#allocation10], %s2500_s13, %s2500_s13, %s2501_s14  }
  0x3c   :  { %s2507_s3 = smov [#allocation12]  }
  0x3d   :  { %s97_s17 = sshll.u32 %s2507_s3, 4  ;;  %s98_s17 = int_to_ptr.vmem [resolvable:$true] %s97_s17 }
  0x3e   :  { %s2454_s18 = scalar_lea.vmem %s98_s17, 1024  ;;  %p2459_p12 = scmp.lt.s32.totalorder %s98_s17, %s98_s17 }
  0x3f   :  { %p2455_p11 = scmp.ne.s32.totalorder %s98_s17, %s2454_s18  ;;  %p2460_p13 = scmp.lt.s32.totalorder %s2454_s18, %s2454_s18 }
  0x41   :  { %p2461_p0 = por %p2460_p13, %p2459_p12 }
  0x43   :  { %p2462_p1 = pnand %p2461_p0, %p2455_p11 }
  0x45   :  { %2465 = shalt.err (!%p2462_p1)
}
  0x46   :  { %103 = dma.hbm_to_vmem [thread:$0]  %s3255_s10, 1024, %s98_s17, [#allocation13], %s2500_s13, %s2500_s13, %s2501_s14  }
  0x47   :  { %2486 = dma.done.wait [#allocation4], 1024  }
  0x48   :  { %2487 = vsyncadd [#allocation4], 4294966272 }
  0x49   :  { %2488 = dma.done.wait [#allocation7], 4864  }
  0x4a   :  { %2489 = vsyncadd [#allocation7], 4294962432 }
  0x4b   :  { %2490 = dma.done.wait [#allocation10], 2048  }
  0x4c   :  { %2491 = vsyncadd [#allocation10], 4294965248 }
  0x4d   :  { %2492 = dma.done.wait [#allocation13], 1024  }
  0x4e   :  { %2493 = vsyncadd [#allocation13], 4294966272  ;;  %vm133_vm0 = vcmask 195584   ;;  %v125_v0 = vld [vmem:[#allocation3] sm:$0xff]  ;;  %v127_v1 = vld [vmem:[#allocation3 + $0x10] sm:$0xff]  ;;  %vm343_vm1 = vcmask 1043456  }
  0x4f   :  { %v126_v2 = vld [vmem:[#allocation3 + $0x8] sm:$0xff]  ;;  %v134_v3 = vsel %vm133_vm0, %v125_v0, 0.0  ;;  %v140_v4 = vsel %vm133_vm0, %v127_v1, 0.0  ;;  %v128_v5 = vld [vmem:[#allocation3 + $0x18] sm:$0xff]  ;;  %v129_v6 = vld [vmem:[#allocation3 + $0x20] sm:$0xff]  ;;  %vm2510_vm2 = vmmov 0  }
  0x50   :  { %135 = vadd.xlane.f32.xlu0 %v134_v3  ;;  %141 = vadd.xlane.f32.xlu1 %v140_v4  ;;  %v130_v7 = vld [vmem:[#allocation3 + $0x28] sm:$0xff]  ;;  %v137_v8 = vsel %vm133_vm0, %v126_v2, 0.0  ;;  %v143_v9 = vsel %vm133_vm0, %v128_v5, 0.0  ;;  %v131_v10 = vld [vmem:[#allocation3 + $0x30] sm:$0xff]  ;;  %v132_v11 = vld [vmem:[#allocation3 + $0x38] sm:$0xff]  ;;  %v146_v12 = vsel %vm133_vm0, %v129_v6, 0.0 }
  0x51   :  { %v149_v13 = vsel %vm133_vm0, %v130_v7, 0.0  ;;  %v152_v14 = vsel %vm133_vm0, %v131_v10, 0.0  ;;  %v155_v15 = vsel %vm133_vm0, %v132_v11, 0.0  ;;  %v277_v56 = vld [vmem:[#allocation6 + $0x20] sm:$0xff]  ;;  %v278_v57 = vld [vmem:[#allocation6 + $0x28] sm:$0xff]  ;;  %s2511_s22 = smov [#allocation14]  }
  0x52   :  { %v1961_v58 = vcombine.high %v277_v56, %v277_v56  ;;  %v1960_v59 = vcombine.low %v277_v56, %v277_v56  ;;  %v1963_v60 = vcombine.high %v278_v57, %v278_v57  ;;  %v1962_v61 = vcombine.low %v278_v57, %v278_v57  ;;  %v2140_v62 = vld [vmem:[#allocation6 + $0x4] ss:$16 sps:$4 sm:$0xff]   ;;  %v2143_v63 = vld [vmem:[#allocation6 + $0xc] ss:$16 sps:$4 sm:$0xff]   ;;  %v2142_v3 = vld [vmem:[#allocation6] ss:$16 sps:$4 sm:$0xff]  }
  0x53   :  { %v2145_v4 = vld [vmem:[#allocation6 + $0x8] ss:$16 sps:$4 sm:$0xff]   ;;  %s1942_s23 = sshll.u32 %s2511_s22, 4  ;;  %s1943_s23 = int_to_ptr.vmem [resolvable:$true] %s1942_s23 }
  0x54   :  { %138 = vadd.xlane.f32.xlu0 %v137_v8  ;;  %144 = vadd.xlane.f32.xlu1 %v143_v9  ;;  %p2471_p3 = scmp.lt.s32.totalorder %s1943_s23, %s1943_s23 }
  0x55   :  { %1964 = vmatprep.subr.msk.bf16.mxu0 %vm343_vm1, %v1961_v58  ;;  %1969 = vmatprep.subr.msk.bf16.mxu1 %vm343_vm1, %v1963_v60  ;;  %v2704_v60 = vld [vmem:[#allocation8 + $0xa4] ss:$16 sps:$4 sm:$0xff]  }
  0x58   :  { %147 = vadd.xlane.f32.xlu0 %v146_v12  ;;  %150 = vadd.xlane.f32.xlu1 %v149_v13 }
  0x5c   :  { %153 = vadd.xlane.f32.xlu0 %v152_v14  ;;  %156 = vadd.xlane.f32.xlu1 %v155_v15 }
  0xd9   :  { %v136_v16 = vpop.xlane.xlu0 %135  ;;  %v142_v17 = vpop.xlane.xlu1 %141 }
  0xda   :  { %v159_v18 = vmul.f32 0.041666668, %v136_v16  ;;  %v161_v19 = vmul.f32 0.041666668, %v142_v17 }
  0xdc   :  { %v2618_v20 = vsub.f32 %v125_v0, %v159_v18  ;;  %v2620_v21 = vsub.f32 %v127_v1, %v161_v19  ;;  %v3258_v0 = vmov 0   ;;  %v345_v1 = vsel %vm343_vm1, %v1960_v59, 0  ;;  %v2700_v59 = vld [vmem:[#allocation8 + $0xc8] ss:$16 sps:$4 sm:$0xff]  }
  0xdd   :  { %v139_v22 = vpop.xlane.xlu0 %138  ;;  %v145_v23 = vpop.xlane.xlu1 %144  ;;  %388 = vmatprep.mubr.bf16.mxu0 %v3258_v0  ;;  %461 = vmatprep.mubr.bf16.mxu1 %v3258_v0 }
  0xde   :  { %v160_v24 = vmul.f32 0.041666668, %v139_v22  ;;  %v162_v25 = vmul.f32 0.041666668, %v145_v23  ;;  %v175_v26 = vmul.f32 %v2618_v20, %v2618_v20  ;;  %v177_v27 = vmul.f32 %v2620_v21, %v2620_v21  ;;  %369 = vmatpush1.bf16.msra.mxu0 %v345_v1 }
  0xdf   :  { %370 = vmatprep.subr.bf16.mxu0 %v2140_v62  ;;  %v2707_v62 = vld [vmem:[#allocation8 + $0xac] ss:$16 sps:$4 sm:$0xff]  }
  0xe0   :  { %v2626_v28 = vsub.f32 %v126_v2, %v160_v24  ;;  %v2628_v29 = vsub.f32 %v128_v5, %v162_v25  ;;  %v183_v30 = vsel %vm133_vm0, %v175_v26, 0.0  ;;  %v189_v33 = vsel %vm133_vm0, %v177_v27, 0.0  ;;  %v2660_v5 = vld [vmem:[#allocation8 + $0xe4] ss:$16 sps:$4 sm:$0xff]  }
  0xe1   :  { %184 = vadd.xlane.f32.xlu0 %v183_v30  ;;  %v148_v31 = vpop.xlane.xlu0 %147  ;;  %v151_v32 = vpop.xlane.xlu1 %150  ;;  %v351_v2 = vsel %vm343_vm1, %v1962_v61, 0 }
  0xe2   :  { %v163_v34 = vmul.f32 0.041666668, %v148_v31  ;;  %v164_v35 = vmul.f32 0.041666668, %v151_v32  ;;  %v176_v36 = vmul.f32 %v2626_v28, %v2626_v28  ;;  %v178_v37 = vmul.f32 %v2628_v29, %v2628_v29  ;;  %442 = vmatpush1.bf16.msra.mxu1 %v351_v2  ;;  %371 = vmatpush1.bf16.msra.mxu0 %v2142_v3  ;;  %v2716_v3 = vld [vmem:[#allocation8 + $0xa0] ss:$16 sps:$4 sm:$0xff]  }
  0xe3   :  { %443 = vmatprep.subr.bf16.mxu1 %v2143_v63  ;;  %730 = vmatprep.subr.bf16.mxu0 %v2660_v5 }
  0xe4   :  { %v2636_v38 = vsub.f32 %v129_v6, %v163_v34  ;;  %v2638_v39 = vsub.f32 %v130_v7, %v164_v35  ;;  %v186_v40 = vsel %vm133_vm0, %v176_v36, 0.0  ;;  %v192_v43 = vsel %vm133_vm0, %v178_v37, 0.0  ;;  %v2663_v6 = vld [vmem:[#allocation8 + $0xec] ss:$16 sps:$4 sm:$0xff]   ;;  %v2670_v35 = vld [vmem:[%s3246_s1] ss:$0 sm:$0xff] }
  0xe5   :  { %190 = vadd.xlane.f32.xlu0 %v189_v33  ;;  %187 = vadd.xlane.f32.xlu1 %v186_v40  ;;  %v154_v41 = vpop.xlane.xlu0 %153  ;;  %v157_v42 = vpop.xlane.xlu1 %156 }
  0xe6   :  { %v165_v44 = vmul.f32 0.041666668, %v154_v41  ;;  %v166_v45 = vmul.f32 0.041666668, %v157_v42  ;;  %v179_v46 = vmul.f32 %v2636_v38, %v2636_v38  ;;  %v180_v47 = vmul.f32 %v2638_v39, %v2638_v39  ;;  %444 = vmatpush1.bf16.msra.mxu1 %v2145_v4  ;;  %v2718_v4 = vld [vmem:[#allocation8 + $0xa8] ss:$16 sps:$4 sm:$0xff]  }
  0xe7   :  { %771 = vmatprep.subr.bf16.mxu1 %v2663_v6 }
  0xe8   :  { %v2646_v48 = vsub.f32 %v131_v10, %v165_v44  ;;  %v2648_v49 = vsub.f32 %v132_v11, %v166_v45  ;;  %v195_v50 = vsel %vm133_vm0, %v179_v46, 0.0  ;;  %v198_v51 = vsel %vm133_vm0, %v180_v47, 0.0  ;;  %v2677_v44 = vld [vmem:[%s3247_s2] ss:$0 sm:$0xff] }
  0xe9   :  { %193 = vadd.xlane.f32.xlu1 %v192_v43  ;;  %196 = vadd.xlane.f32.xlu0 %v195_v50 }
  0xea   :  { %v181_v52 = vmul.f32 %v2646_v48, %v2646_v48  ;;  %v182_v53 = vmul.f32 %v2648_v49, %v2648_v49 }
  0xec   :  { %v201_v54 = vsel %vm133_vm0, %v181_v52, 0.0  ;;  %v204_v55 = vsel %vm133_vm0, %v182_v53, 0.0  ;;  %v2686_v52 = vld [vmem:[#allocation8 + $0xe8] ss:$16 sps:$4 sm:$0xff]  }
  0xed   :  { %199 = vadd.xlane.f32.xlu1 %v198_v51  ;;  %202 = vadd.xlane.f32.xlu0 %v201_v54  ;;  %v2684_v51 = vld [vmem:[#allocation8 + $0xe0] ss:$16 sps:$4 sm:$0xff]   ;;  %v2688_v54 = vld [vmem:[#allocation8 + $0xc4] ss:$16 sps:$4 sm:$0xff]  }
  0xf1   :  { %205 = vadd.xlane.f32.xlu1 %v204_v55  ;;  %v2690_v55 = vld [vmem:[#allocation8 + $0xcc] ss:$16 sps:$4 sm:$0xff]  }
 0x16a   :  { %v185_v7 = vpop.xlane.xlu0 %184 }
 0x16b   :  { %v207_v8 = vmul.f32 0.041666668, %v185_v7 }
 0x16d   :  { %v215_v9 = vadd.f32 1e-05, %v207_v8  ;;  %v2724_v8 = vld [vmem:[#allocation8 + $0x8c] ss:$16 sps:$4 sm:$0xff]  }
 0x16e   :  { %v188_v10 = vpop.xlane.xlu1 %187  ;;  %v191_v11 = vpop.xlane.xlu0 %190 }
 0x16f   :  { %2218 = vrsqrt.f32 %v215_v9  ;;  %v208_v12 = vmul.f32 0.041666668, %v188_v10  ;;  %v209_v13 = vmul.f32 0.041666668, %v191_v11 }
 0x171   :  { %v216_v14 = vadd.f32 1e-05, %v208_v12  ;;  %v217_v15 = vadd.f32 1e-05, %v209_v13  ;;  %v2732_v12 = vld [vmem:[#allocation8 + $0x80] ss:$16 sps:$4 sm:$0xff]  }
 0x172   :  { %v194_v16 = vpop.xlane.xlu1 %193  ;;  %v197_v17 = vpop.xlane.xlu0 %196  ;;  %v2734_v13 = vld [vmem:[#allocation8 + $0x88] ss:$16 sps:$4 sm:$0xff]  }
 0x173   :  { %2220 = vrsqrt.f32 %v216_v14  ;;  %v210_v18 = vmul.f32 0.041666668, %v194_v16  ;;  %v211_v22 = vmul.f32 0.041666668, %v197_v17  ;;  %v2738_v14 = vld [vmem:[#allocation8 + $0x64] ss:$16 sps:$4 sm:$0xff]  }
 0x174   :  { %2222 = vrsqrt.f32 %v217_v15  ;;  %v2741_v16 = vld [vmem:[#allocation8 + $0x6c] ss:$16 sps:$4 sm:$0xff]  }
 0x175   :  { %v218_v19 = vadd.f32 1e-05, %v210_v18  ;;  %v219_v25 = vadd.f32 1e-05, %v211_v22  ;;  %v2750_v22 = vld [vmem:[#allocation8 + $0x60] ss:$16 sps:$4 sm:$0xff]  }
 0x176   :  { %v200_v23 = vpop.xlane.xlu1 %199  ;;  %v203_v27 = vpop.xlane.xlu0 %202 }
 0x177   :  { %2224 = vrsqrt.f32 %v218_v19  ;;  %v212_v24 = vmul.f32 0.041666668, %v200_v23  ;;  %v213_v33 = vmul.f32 0.041666668, %v203_v27  ;;  %v2752_v23 = vld [vmem:[#allocation8 + $0x68] ss:$16 sps:$4 sm:$0xff]  }
 0x178   :  { %v2766_v27 = vld [vmem:[#allocation8 + $0x40] ss:$16 sps:$4 sm:$0xff]  }
 0x179   :  { %v220_v26 = vadd.f32 1e-05, %v212_v24  ;;  %v221_v40 = vadd.f32 1e-05, %v213_v33  ;;  %v2775_v33 = vld [vmem:[#allocation8 + $0x2c] ss:$16 sps:$4 sm:$0xff]  }
 0x17a   :  { %v206_v30 = vpop.xlane.xlu1 %205 }
 0x17b   :  { %2226 = vrsqrt.f32 %v220_v26  ;;  %v214_v31 = vmul.f32 0.041666668, %v206_v30  ;;  %v2768_v30 = vld [vmem:[#allocation8 + $0x48] ss:$16 sps:$4 sm:$0xff]  }
 0x17c   :  { %v2219_v32 = vpop.eup %2218  ;;  %2228 = vrsqrt.f32 %v219_v25  ;;  %v2758_v25 = vld [vmem:[#allocation8 + $0x4c] ss:$16 sps:$4 sm:$0xff]  }
 0x17d   :  { %v231_v34 = vmul.f32 %v2219_v32, %v2618_v20  ;;  %v222_v36 = vadd.f32 1e-05, %v214_v31  ;;  %v2772_v31 = vld [vmem:[#allocation8 + $0x24] ss:$16 sps:$4 sm:$0xff]  }
 0x17f   :  { %v246_v42 = vmul.f32 %v2670_v35, %v231_v34  ;;  %2230 = vrsqrt.f32 %v222_v36  ;;  %v2784_v36 = vld [vmem:[#allocation8 + $0x28] ss:$16 sps:$4 sm:$0xff]  }
 0x180   :  { %v2221_v37 = vpop.eup %2220  ;;  %2232 = vrsqrt.f32 %v221_v40  ;;  %v2788_v40 = vld [vmem:[#allocation8 + $0x4] ss:$16 sps:$4 sm:$0xff]  }
 0x181   :  { %v232_v41 = vmul.f32 %v2221_v37, %v2626_v28  ;;  %v2223_v43 = vpop.eup %2222  ;;  %v261_v46 = vadd.f32 %v2677_v44, %v246_v42  ;;  %v2796_v42 = vld [vmem:[#allocation8] ss:$16 sps:$4 sm:$0xff]  }
 0x182   :  { %v233_v50 = vmul.f32 %v2223_v43, %v2620_v21  ;;  %v2798_v43 = vld [vmem:[#allocation8 + $0x8] ss:$16 sps:$4 sm:$0xff]  }
 0x183   :  { %v247_v20 = vmul.f32 %v2670_v35, %v232_v41  ;;  %v2790_v41 = vld [vmem:[#allocation8 + $0xc] ss:$16 sps:$4 sm:$0xff]  }
 0x184   :  { %v2225_v45 = vpop.eup %2224  ;;  %v248_v21 = vmul.f32 %v2670_v35, %v233_v50 }
 0x185   :  { %v262_v47 = vadd.f32 %v2677_v44, %v247_v20  ;;  %v234_v28 = vmul.f32 %v2225_v45, %v2628_v29  ;;  %v2698_v29 = vld [vmem:[#allocation8 + $0xc0] ss:$16 sps:$4 sm:$0xff]  }
 0x186   :  { %v263_v1 = vadd.f32 %v2677_v44, %v248_v21 }
 0x187   :  { %v269_v53 = vpack.c.bf16 %v262_v47, %v261_v46  ;;  %v249_v56 = vmul.f32 %v2670_v35, %v234_v28  ;;  %v279_v47 = vld [vmem:[%s3250_s5] sm:$0xf] }
 0x188   :  { %v2227_v57 = vpop.eup %2226 }
 0x189   :  { %1965 = vmatmul.mubr.msk.bf16.vlgmr.msra.gmra.mxu0 %vm133_vm0, %v269_v53  ;;  %1970 = vmatmul.mubr.msk.bf16.vlgmr.msra.gmra.mxu1 %vm133_vm0, %v269_v53  ;;  %v2229_v58 = vpop.eup %2228  ;;  %v264_v61 = vadd.f32 %v2677_v44, %v249_v56  ;;  %v236_v63 = vmul.f32 %v2227_v57, %v2638_v39  ;;  %v2722_v39 = vld [vmem:[#allocation8 + $0x84] ss:$16 sps:$4 sm:$0xff]  }
 0x18a   :  { %731 = vmatpush1.bf16.msra.mxu0 %v2684_v51  ;;  %772 = vmatpush1.bf16.msra.mxu1 %v2686_v52  ;;  %v235_v2 = vmul.f32 %v2229_v58, %v2636_v38 }
 0x18b   :  { %732 = vmatprep.subr.bf16.mxu0 %v2688_v54  ;;  %773 = vmatprep.subr.bf16.mxu1 %v2690_v55  ;;  %v270_v7 = vpack.c.bf16 %v264_v61, %v263_v1  ;;  %v251_v9 = vmul.f32 %v2670_v35, %v236_v63 }
 0x18c   :  { %398 = vmatprep.mubr.bf16.mxu0 %v3258_v0  ;;  %471 = vmatprep.mubr.bf16.mxu1 %v3258_v0  ;;  %v2231_v38 = vpop.eup %2230  ;;  %v250_v11 = vmul.f32 %v2670_v35, %v235_v2 }
 0x18d   :  { %v2233_v10 = vpop.eup %2232  ;;  %v266_v15 = vadd.f32 %v2677_v44, %v251_v9  ;;  %v238_v17 = vmul.f32 %v2231_v38, %v2648_v49  ;;  %v2756_v49 = vld [vmem:[#allocation8 + $0x44] ss:$16 sps:$4 sm:$0xff]  }
 0x18e   :  { %733 = vmatpush1.bf16.msra.mxu0 %v2698_v29  ;;  %774 = vmatpush1.bf16.msra.mxu1 %v2700_v59  ;;  %v265_v18 = vadd.f32 %v2677_v44, %v250_v11  ;;  %v237_v19 = vmul.f32 %v2233_v10, %v2646_v48 }
 0x18f   :  { %734 = vmatprep.subr.bf16.mxu0 %v2704_v60  ;;  %775 = vmatprep.subr.bf16.mxu1 %v2707_v62  ;;  %v253_v26 = vmul.f32 %v2670_v35, %v238_v17 }
 0x190   :  { %v271_v24 = vpack.c.bf16 %v266_v15, %v265_v18  ;;  %v252_v48 = vmul.f32 %v2670_v35, %v237_v19  ;;  %v2782_v35 = vld [vmem:[#allocation8 + $0x20] ss:$16 sps:$4 sm:$0xff]  }
 0x191   :  { %1966 = vmatmul.mubr.msk.bf16.gmra.mxu0 %vm133_vm0, %v270_v7  ;;  %1971 = vmatmul.mubr.msk.bf16.gmra.mxu1 %vm133_vm0, %v270_v7  ;;  %v268_v32 = vadd.f32 %v2677_v44, %v253_v26 }
 0x192   :  { %735 = vmatpush1.bf16.msra.mxu0 %v2716_v3  ;;  %776 = vmatpush1.bf16.msra.mxu1 %v2718_v4  ;;  %v267_v34 = vadd.f32 %v2677_v44, %v252_v48  ;;  %v281_v44 = vlaneseq }
 0x193   :  { %736 = vmatprep.subr.bf16.mxu0 %v2722_v39  ;;  %777 = vmatprep.subr.bf16.mxu1 %v2724_v8 }
 0x194   :  { %408 = vmatprep.mubr.bf16.mxu0 %v3258_v0  ;;  %481 = vmatprep.mubr.bf16.mxu1 %v3258_v0  ;;  %v272_v37 = vpack.c.bf16 %v268_v32, %v267_v34  ;;  %v282_v20 = vshrl.u32 %v281_v44, 7 }
 0x196   :  { %737 = vmatpush1.bf16.msra.mxu0 %v2732_v12  ;;  %778 = vmatpush1.bf16.msra.mxu1 %v2734_v13  ;;  %v283_v45 = vsub.s32 0, %v282_v20  ;;  %v291_v46 = vsub.s32 2, %v282_v20  ;;  %v287_v53 = vsub.s32 1, %v282_v20  ;;  %v295_v56 = vsub.s32 3, %v282_v20 }
 0x197   :  { %738 = vmatprep.subr.bf16.mxu0 %v2738_v14  ;;  %779 = vmatprep.subr.bf16.mxu1 %v2741_v16 }
 0x198   :  { %v284_v58 = vrot.slane %v279_v47, %v283_v45  ;;  %v2855_v61 = vrot.slane %v279_v47, %v291_v46  ;;  %v288_v2 = vrot.slane %v279_v47, %v287_v53  ;;  %v2857_v7 = vrot.slane %v279_v47, %v295_v56 }
 0x199   :  { %1967 = vmatmul.mubr.msk.bf16.gmra.mxu0 %vm133_vm0, %v271_v24  ;;  %1972 = vmatmul.mubr.msk.bf16.gmra.mxu1 %vm133_vm0, %v271_v24 }
 0x19a   :  { %739 = vmatpush1.bf16.msra.mxu0 %v2750_v22  ;;  %780 = vmatpush1.bf16.msra.mxu1 %v2752_v23 }
 0x19b   :  { %740 = vmatprep.subr.bf16.mxu0 %v2756_v49  ;;  %781 = vmatprep.subr.bf16.mxu1 %v2758_v25 }
 0x19c   :  { %418 = vmatprep.mubr.bf16.mxu0 %v3258_v0  ;;  %491 = vmatprep.mubr.bf16.mxu1 %v3258_v0 }
 0x19e   :  { %741 = vmatpush1.bf16.msra.mxu0 %v2766_v27  ;;  %782 = vmatpush1.bf16.msra.mxu1 %v2768_v30 }
 0x19f   :  { %742 = vmatprep.subr.bf16.mxu0 %v2772_v31  ;;  %783 = vmatprep.subr.bf16.mxu1 %v2775_v33 }
 0x1a1   :  { %1968 = vmatmul.mubr.msk.bf16.gmra.mxu0 %vm133_vm0, %v272_v37  ;;  %1973 = vmatmul.mubr.msk.bf16.gmra.mxu1 %vm133_vm0, %v272_v37 }
 0x1a2   :  { %743 = vmatpush1.bf16.msra.mxu0 %v2782_v35  ;;  %784 = vmatpush1.bf16.msra.mxu1 %v2784_v36 }
 0x1a3   :  { %744 = vmatprep.subr.bf16.mxu0 %v2788_v40  ;;  %785 = vmatprep.subr.bf16.mxu1 %v2790_v41 }
 0x1a4   :  { %762 = vmatprep.mubr.bf16.mxu0 %v3258_v0  ;;  %803 = vmatprep.mubr.bf16.mxu1 %v3258_v0 }
 0x1a6   :  { %745 = vmatpush1.bf16.msra.mxu0 %v2796_v42  ;;  %786 = vmatpush1.bf16.msra.mxu1 %v2798_v43 }
 0x1a7   :  { %839 = vmatprep.subr.bf16.mxu0 %v2660_v5  ;;  %880 = vmatprep.subr.bf16.mxu1 %v2663_v6 }
 0x1a9   :  { %763 = vmatmul.mubr.bf16.vlgmr.msra.gmra.mxu0 %v3258_v0  ;;  %804 = vmatmul.mubr.bf16.vlgmr.msra.gmra.mxu1 %v3258_v0 }
 0x1aa   :  { %840 = vmatpush1.bf16.msra.mxu0 %v2684_v51  ;;  %881 = vmatpush1.bf16.msra.mxu1 %v2686_v52 }
 0x1ab   :  { %841 = vmatprep.subr.bf16.mxu0 %v2688_v54  ;;  %882 = vmatprep.subr.bf16.mxu1 %v2690_v55 }
 0x1ac   :  { %871 = vmatprep.mubr.bf16.mxu0 %v3258_v0  ;;  %912 = vmatprep.mubr.bf16.mxu1 %v3258_v0 }
 0x1ae   :  { %842 = vmatpush1.bf16.msra.mxu0 %v2698_v29  ;;  %883 = vmatpush1.bf16.msra.mxu1 %v2700_v59 }
 0x1af   :  { %843 = vmatprep.subr.bf16.mxu0 %v2704_v60  ;;  %884 = vmatprep.subr.bf16.mxu1 %v2707_v62 }
 0x1b2   :  { %844 = vmatpush1.bf16.msra.mxu0 %v2716_v3  ;;  %885 = vmatpush1.bf16.msra.mxu1 %v2718_v4 }
 0x1b3   :  { %845 = vmatprep.subr.bf16.mxu0 %v2722_v39  ;;  %886 = vmatprep.subr.bf16.mxu1 %v2724_v8 }
 0x1b6   :  { %846 = vmatpush1.bf16.msra.mxu0 %v2732_v12  ;;  %887 = vmatpush1.bf16.msra.mxu1 %v2734_v13 }
 0x1b7   :  { %847 = vmatprep.subr.bf16.mxu0 %v2738_v14  ;;  %888 = vmatprep.subr.bf16.mxu1 %v2741_v16 }
 0x1ba   :  { %848 = vmatpush1.bf16.msra.mxu0 %v2750_v22  ;;  %889 = vmatpush1.bf16.msra.mxu1 %v2752_v23 }
 0x1bb   :  { %849 = vmatprep.subr.bf16.mxu0 %v2756_v49  ;;  %890 = vmatprep.subr.bf16.mxu1 %v2758_v25 }
 0x1be   :  { %850 = vmatpush1.bf16.msra.mxu0 %v2766_v27  ;;  %891 = vmatpush1.bf16.msra.mxu1 %v2768_v30 }
 0x1bf   :  { %851 = vmatprep.subr.bf16.mxu0 %v2772_v31  ;;  %892 = vmatprep.subr.bf16.mxu1 %v2775_v33 }
 0x1c2   :  { %852 = vmatpush1.bf16.msra.mxu0 %v2782_v35  ;;  %893 = vmatpush1.bf16.msra.mxu1 %v2784_v36 }
 0x1c3   :  { %853 = vmatprep.subr.bf16.mxu0 %v2788_v40  ;;  %894 = vmatprep.subr.bf16.mxu1 %v2790_v41 }
 0x1c6   :  { %854 = vmatpush1.bf16.msra.mxu0 %v2796_v42  ;;  %895 = vmatpush1.bf16.msra.mxu1 %v2798_v43 }
 0x1c7   :  { %948 = vmatprep.subr.bf16.mxu0 %v2660_v5  ;;  %989 = vmatprep.subr.bf16.mxu1 %v2663_v6 }
 0x249   :  { %v2847_v50 = vpop.f32.mrf.mxu0  ;;  %v2849_v28 = vpop.f32.mrf.mxu1 }
 0x24b   :  { %v2851_v57 = vpop.f32.mrf.mxu0  ;;  %v2853_v21 = vpop.f32.mrf.mxu1 }
 0x24d   :  { %v394_v63 = vpop.f32.mrf.mxu0  ;;  %v467_v1 = vpop.f32.mrf.mxu1 }
 0x24e   :  { %v2859_v9 = vadd.f32 %v394_v63, %v284_v58  ;;  %v2862_v38 = vadd.f32 %v467_v1, %v2855_v61 }
 0x24f   :  { %v396_v10 = vpop.f32.mrf.mxu0  ;;  %v469_v11 = vpop.f32.mrf.mxu1 }
 0x250   :  { %v2864_v15 = vadd.f32 %v396_v10, %v288_v2  ;;  %v2867_v17 = vadd.f32 %v469_v11, %v2857_v7 }
 0x251   :  { %v400_v18 = vpop.f32.mrf.mxu0  ;;  %v473_v19 = vpop.f32.mrf.mxu1 }
 0x252   :  { %v2869_v24 = vadd.f32 %v400_v18, %v284_v58  ;;  %v2872_v26 = vadd.f32 %v473_v19, %v2855_v61 }
 0x253   :  { %v402_v48 = vpop.f32.mrf.mxu0  ;;  %v475_v32 = vpop.f32.mrf.mxu1 }
 0x254   :  { %v2874_v34 = vadd.f32 %v402_v48, %v288_v2  ;;  %v2877_v37 = vadd.f32 %v475_v32, %v2857_v7 }
 0x255   :  { %v404_v44 = vpop.f32.mrf.mxu0  ;;  %v477_v20 = vpop.f32.mrf.mxu1 }
 0x256   :  { %v2879_v45 = vadd.f32 %v404_v44, %v284_v58  ;;  %v2882_v46 = vadd.f32 %v477_v20, %v2855_v61 }
 0x257   :  { %v406_v47 = vpop.f32.mrf.mxu0  ;;  %v479_v53 = vpop.f32.mrf.mxu1 }
 0x258   :  { %3260 = vst [vmem:[#allocation20_spill] sm:$0xff] %v2879_v45  ;;  %3261 = vst [vmem:[#allocation21_spill] sm:$0xff] %v2882_v46  ;;  %v2884_v56 = vadd.f32 %v406_v47, %v288_v2  ;;  %v2887_v63 = vadd.f32 %v479_v53, %v2857_v7  ;;  %v464_v45 = vadd.f32 %v2849_v28, %v2855_v61 }
 0x259   :  { %v410_v1 = vpop.f32.mrf.mxu0  ;;  %v483_v10 = vpop.f32.mrf.mxu1 }
 0x25a   :  { %3262 = vst [vmem:[#allocation22_spill] sm:$0xff] %v2884_v56  ;;  %3263 = vst [vmem:[#allocation23_spill] sm:$0xff] %v2887_v63  ;;  %v2889_v11 = vadd.f32 %v410_v1, %v284_v58  ;;  %v2892_v18 = vadd.f32 %v483_v10, %v2855_v61 }
 0x25b   :  { %v412_v19 = vpop.f32.mrf.mxu0  ;;  %v485_v48 = vpop.f32.mrf.mxu1 }
 0x25c   :  { %3264 = vst [vmem:[#allocation24_spill] sm:$0xff] %v2889_v11  ;;  %3265 = vst [vmem:[#allocation25_spill] sm:$0xff] %v2892_v18  ;;  %v2894_v32 = vadd.f32 %v412_v19, %v288_v2  ;;  %v2897_v44 = vadd.f32 %v485_v48, %v2857_v7 }
 0x25d   :  { %v414_v20 = vpop.f32.mrf.mxu0  ;;  %v487_v47 = vpop.f32.mrf.mxu1 }
 0x25e   :  { %3266 = vst [vmem:[#allocation26_spill] sm:$0xff] %v2894_v32  ;;  %3267 = vst [vmem:[#allocation27_spill] sm:$0xff] %v2897_v44  ;;  %v2899_v0 = vadd.f32 %v414_v20, %v284_v58  ;;  %v2902_v53 = vadd.f32 %v487_v47, %v2855_v61 }
 0x25f   :  { %v416_v63 = vpop.f32.mrf.mxu0  ;;  %v489_v1 = vpop.f32.mrf.mxu1 }
 0x260   :  { %3268 = vst [vmem:[#allocation28_spill] sm:$0xff] %v2899_v0  ;;  %3269 = vst [vmem:[#allocation29_spill] sm:$0xff] %v2902_v53  ;;  %v2904_v11 = vadd.f32 %v416_v63, %v288_v2  ;;  %v2907_v10 = vadd.f32 %v489_v1, %v2857_v7 }
 0x261   :  { %v420_v18 = vpop.f32.mrf.mxu0  ;;  %v493_v19 = vpop.f32.mrf.mxu1 }
 0x262   :  { %3270 = vst [vmem:[#allocation30_spill] sm:$0xff] %v2904_v11  ;;  %3271 = vst [vmem:[#allocation31_spill] sm:$0xff] %v2907_v10  ;;  %v2909_v32 = vadd.f32 %v420_v18, %v284_v58  ;;  %v2912_v48 = vadd.f32 %v493_v19, %v2855_v61 }
 0x263   :  { %v422_v44 = vpop.f32.mrf.mxu0  ;;  %v495_v20 = vpop.f32.mrf.mxu1 }
 0x264   :  { %3272 = vst [vmem:[#allocation32_spill] sm:$0xff] %v2909_v32  ;;  %3273 = vst [vmem:[#allocation33_spill] sm:$0xff] %v2912_v48  ;;  %v2914_v0 = vadd.f32 %v422_v44, %v288_v2  ;;  %v2917_v47 = vadd.f32 %v495_v20, %v2857_v7  ;;  %v391_v32 = vadd.f32 %v2847_v50, %v284_v58 }
 0x265   :  { %v424_v53 = vpop.f32.mrf.mxu0  ;;  %v497_v63 = vpop.f32.mrf.mxu1  ;;  %v393_v20 = vadd.f32 %v2851_v57, %v288_v2 }
 0x266   :  { %3274 = vst [vmem:[#allocation34_spill] sm:$0xff] %v2914_v0  ;;  %3275 = vst [vmem:[#allocation35_spill] sm:$0xff] %v2917_v47  ;;  %v2919_v11 = vadd.f32 %v424_v53, %v284_v58  ;;  %v2922_v1 = vadd.f32 %v497_v63, %v2855_v61 }
 0x267   :  { %v426_v10 = vpop.f32.mrf.mxu0  ;;  %v499_v18 = vpop.f32.mrf.mxu1 }
 0x268   :  { %3276 = vst [vmem:[#allocation36_spill] sm:$0xff] %v2919_v11  ;;  %3277 = vst [vmem:[#allocation37_spill] sm:$0xff] %v2922_v1  ;;  %v2925_v19 = vadd.f32 %v426_v10, %v288_v2  ;;  %v2928_v48 = vadd.f32 %v499_v18, %v2857_v7 }
 0x269   :  { %v764_v44 = vpop.f32.mrf.mxu0  ;;  %v805_v0 = vpop.f32.mrf.mxu1 }
 0x26a   :  { %3278 = vst [vmem:[#allocation38_spill] sm:$0xff] %v2928_v48  ;;  %v812_v47 = vadd.f32 %v764_v44, %v391_v32  ;;  %v814_v18 = vadd.f32 %v805_v0, %v464_v45  ;;  %v466_v48 = vadd.f32 %v2853_v21, %v2857_v7 }
 0x26b   :  { %v766_v46 = vpop.f32.mrf.mxu0  ;;  %v807_v53 = vpop.f32.mrf.mxu1 }
 0x26c   :  { %v816_v11 = vmul.f32 0.5, %v812_v47  ;;  %v813_v56 = vadd.f32 %v766_v46, %v393_v20  ;;  %v815_v57 = vadd.f32 %v807_v53, %v466_v48 }
 0x26d   :  { %v768_v63 = vpop.f32.mrf.mxu0  ;;  %v809_v1 = vpop.f32.mrf.mxu1 }
 0x26e   :  { %2234 = vtanh.f32 %v816_v11  ;;  %v820_v50 = vmul.f32 0.5, %v813_v56  ;;  %v825_v2 = vmul.f32 0.5, %v815_v57  ;;  %v3279_v63 = vmov 0  }
 0x26f   :  { %v769_v58 = vpop.f32.mrf.mxu0  ;;  %v810_v10 = vpop.f32.mrf.mxu1 }
 0x270   :  { %2236 = vtanh.f32 %v820_v50 }
 0x271   :  { %2238 = vtanh.f32 %v814_v18 }
 0x272   :  { %2240 = vtanh.f32 %v825_v2 }
 0x27b   :  { %v2235_v32 = vpop.eup %2234 }
 0x27c   :  { %v818_v47 = vmul.f32 0.5, %v2235_v32 }
 0x27d   :  { %v2237_v46 = vpop.eup %2236 }
 0x27e   :  { %v819_v44 = vadd.f32 0.5, %v818_v47  ;;  %v822_v1 = vmul.f32 0.5, %v2237_v46  ;;  %v2239_v28 = vpop.eup %2238 }
 0x27f   :  { %v2241_v0 = vpop.eup %2240 }
 0x280   :  { %v823_v20 = vadd.f32 0.5, %v822_v1  ;;  %v830_v56 = vmul.f32 %v2239_v28, %v819_v44  ;;  %v827_v45 = vmul.f32 0.5, %v2241_v0 }
 0x282   :  { %v829_v61 = vmul.f32 0.0, %v823_v20  ;;  %v828_v21 = vadd.f32 0.5, %v827_v45 }
 0x284   :  { %v2935_v11 = vadd.f32 %v830_v56, %v829_v61 }
 0x286   :  { %2242 = vtanh.f32 %v2935_v11 }
 0x293   :  { %v2243_v7 = vpop.eup %2242 }
 0x294   :  { %v833_v48 = vmul.f32 %v2243_v7, %v828_v21 }
 0x296   :  { %v838_v53 = vpack.c.bf16 %v833_v48, %v833_v48 }
 0x298   :  { %872 = vmatmul.mubr.bf16.vlgmr.msra.gmra.mxu0 %v838_v53  ;;  %913 = vmatmul.mubr.bf16.vlgmr.msra.gmra.mxu1 %v838_v53 }
 0x299   :  { %949 = vmatpush1.bf16.msra.mxu0 %v2684_v51  ;;  %990 = vmatpush1.bf16.msra.mxu1 %v2686_v52 }
 0x29a   :  { %950 = vmatprep.subr.bf16.mxu0 %v2688_v54  ;;  %991 = vmatprep.subr.bf16.mxu1 %v2690_v55 }
 0x29b   :  { %980 = vmatprep.mubr.bf16.mxu0 %v3279_v63  ;;  %1021 = vmatprep.mubr.bf16.mxu1 %v3279_v63 }
 0x29d   :  { %951 = vmatpush1.bf16.msra.mxu0 %v2698_v29  ;;  %992 = vmatpush1.bf16.msra.mxu1 %v2700_v59 }
 0x29e   :  { %952 = vmatprep.subr.bf16.mxu0 %v2704_v60  ;;  %993 = vmatprep.subr.bf16.mxu1 %v2707_v62 }
 0x2a1   :  { %953 = vmatpush1.bf16.msra.mxu0 %v2716_v3  ;;  %994 = vmatpush1.bf16.msra.mxu1 %v2718_v4 }
 0x2a2   :  { %954 = vmatprep.subr.bf16.mxu0 %v2722_v39  ;;  %995 = vmatprep.subr.bf16.mxu1 %v2724_v8 }
 0x2a5   :  { %955 = vmatpush1.bf16.msra.mxu0 %v2732_v12  ;;  %996 = vmatpush1.bf16.msra.mxu1 %v2734_v13 }
 0x2a6   :  { %956 = vmatprep.subr.bf16.mxu0 %v2738_v14  ;;  %997 = vmatprep.subr.bf16.mxu1 %v2741_v16 }
 0x2a9   :  { %957 = vmatpush1.bf16.msra.mxu0 %v2750_v22  ;;  %998 = vmatpush1.bf16.msra.mxu1 %v2752_v23 }
 0x2aa   :  { %958 = vmatprep.subr.bf16.mxu0 %v2756_v49  ;;  %999 = vmatprep.subr.bf16.mxu1 %v2758_v25 }
 0x2ad   :  { %959 = vmatpush1.bf16.msra.mxu0 %v2766_v27  ;;  %1000 = vmatpush1.bf16.msra.mxu1 %v2768_v30 }
 0x2ae   :  { %960 = vmatprep.subr.bf16.mxu0 %v2772_v31  ;;  %1001 = vmatprep.subr.bf16.mxu1 %v2775_v33 }
 0x2b1   :  { %961 = vmatpush1.bf16.msra.mxu0 %v2782_v35  ;;  %1002 = vmatpush1.bf16.msra.mxu1 %v2784_v36 }
 0x2b2   :  { %962 = vmatprep.subr.bf16.mxu0 %v2788_v40  ;;  %1003 = vmatprep.subr.bf16.mxu1 %v2790_v41 }
 0x2b5   :  { %963 = vmatpush1.bf16.msra.mxu0 %v2796_v42  ;;  %1004 = vmatpush1.bf16.msra.mxu1 %v2798_v43 }
 0x2b6   :  { %1057 = vmatprep.subr.bf16.mxu0 %v2660_v5  ;;  %1098 = vmatprep.subr.bf16.mxu1 %v2663_v6 }
 0x358   :  { %v873_v50 = vpop.f32.mrf.mxu0  ;;  %v914_v58 = vpop.f32.mrf.mxu1 }
 0x359   :  { %v921_v10 = vadd.f32 %v873_v50, %v2859_v9  ;;  %v923_v44 = vadd.f32 %v914_v58, %v2862_v38 }
 0x35a   :  { %v875_v18 = vpop.f32.mrf.mxu0  ;;  %v916_v57 = vpop.f32.mrf.mxu1 }
 0x35b   :  { %v925_v2 = vmul.f32 0.5, %v921_v10  ;;  %v922_v32 = vadd.f32 %v875_v18, %v2864_v15  ;;  %v924_v61 = vadd.f32 %v916_v57, %v2867_v17 }
 0x35c   :  { %v877_v47 = vpop.f32.mrf.mxu0  ;;  %v918_v46 = vpop.f32.mrf.mxu1 }
 0x35d   :  { %2244 = vtanh.f32 %v925_v2  ;;  %v929_v1 = vmul.f32 0.5, %v922_v32  ;;  %v934_v56 = vmul.f32 0.5, %v924_v61 }
 0x35e   :  { %v878_v20 = vpop.f32.mrf.mxu0  ;;  %v919_v28 = vpop.f32.mrf.mxu1 }
 0x35f   :  { %2246 = vtanh.f32 %v929_v1 }
 0x360   :  { %2248 = vtanh.f32 %v923_v44 }
 0x361   :  { %2250 = vtanh.f32 %v934_v56 }
 0x36a   :  { %v2245_v0 = vpop.eup %2244 }
 0x36b   :  { %v927_v9 = vmul.f32 0.5, %v2245_v0 }
 0x36c   :  { %v2247_v45 = vpop.eup %2246 }
 0x36d   :  { %v928_v21 = vadd.f32 0.5, %v927_v9  ;;  %v931_v7 = vmul.f32 0.5, %v2247_v45  ;;  %v2249_v15 = vpop.eup %2248 }
 0x36e   :  { %v2251_v58 = vpop.eup %2250 }
 0x36f   :  { %v932_v48 = vadd.f32 0.5, %v931_v7  ;;  %v939_v53 = vmul.f32 %v2249_v15, %v928_v21  ;;  %v936_v10 = vmul.f32 0.5, %v2251_v58 }
 0x371   :  { %v938_v50 = vmul.f32 %v932_v48, %v2935_v11  ;;  %v937_v18 = vadd.f32 0.5, %v936_v10 }
 0x373   :  { %v2977_v38 = vadd.f32 %v939_v53, %v938_v50 }
 0x375   :  { %2252 = vtanh.f32 %v2977_v38 }
 0x382   :  { %v2253_v17 = vpop.eup %2252 }
 0x383   :  { %v942_v57 = vmul.f32 %v2253_v17, %v937_v18 }
 0x385   :  { %v947_v2 = vpack.c.bf16 %v942_v57, %v942_v57 }
 0x387   :  { %981 = vmatmul.mubr.bf16.vlgmr.msra.gmra.mxu0 %v947_v2  ;;  %1022 = vmatmul.mubr.bf16.vlgmr.msra.gmra.mxu1 %v947_v2 }
 0x388   :  { %1058 = vmatpush1.bf16.msra.mxu0 %v2684_v51  ;;  %1099 = vmatpush1.bf16.msra.mxu1 %v2686_v52 }
 0x389   :  { %1059 = vmatprep.subr.bf16.mxu0 %v2688_v54  ;;  %1100 = vmatprep.subr.bf16.mxu1 %v2690_v55 }
 0x38a   :  { %1089 = vmatprep.mubr.bf16.mxu0 %v3279_v63  ;;  %1130 = vmatprep.mubr.bf16.mxu1 %v3279_v63 }
 0x38c   :  { %1060 = vmatpush1.bf16.msra.mxu0 %v2698_v29  ;;  %1101 = vmatpush1.bf16.msra.mxu1 %v2700_v59 }
 0x38d   :  { %1061 = vmatprep.subr.bf16.mxu0 %v2704_v60  ;;  %1102 = vmatprep.subr.bf16.mxu1 %v2707_v62 }
 0x390   :  { %1062 = vmatpush1.bf16.msra.mxu0 %v2716_v3  ;;  %1103 = vmatpush1.bf16.msra.mxu1 %v2718_v4 }
 0x391   :  { %1063 = vmatprep.subr.bf16.mxu0 %v2722_v39  ;;  %1104 = vmatprep.subr.bf16.mxu1 %v2724_v8 }
 0x394   :  { %1064 = vmatpush1.bf16.msra.mxu0 %v2732_v12  ;;  %1105 = vmatpush1.bf16.msra.mxu1 %v2734_v13 }
 0x395   :  { %1065 = vmatprep.subr.bf16.mxu0 %v2738_v14  ;;  %1106 = vmatprep.subr.bf16.mxu1 %v2741_v16 }
 0x398   :  { %1066 = vmatpush1.bf16.msra.mxu0 %v2750_v22  ;;  %1107 = vmatpush1.bf16.msra.mxu1 %v2752_v23 }
 0x399   :  { %1067 = vmatprep.subr.bf16.mxu0 %v2756_v49  ;;  %1108 = vmatprep.subr.bf16.mxu1 %v2758_v25 }
 0x39c   :  { %1068 = vmatpush1.bf16.msra.mxu0 %v2766_v27  ;;  %1109 = vmatpush1.bf16.msra.mxu1 %v2768_v30 }
 0x39d   :  { %1069 = vmatprep.subr.bf16.mxu0 %v2772_v31  ;;  %1110 = vmatprep.subr.bf16.mxu1 %v2775_v33 }
 0x3a0   :  { %1070 = vmatpush1.bf16.msra.mxu0 %v2782_v35  ;;  %1111 = vmatpush1.bf16.msra.mxu1 %v2784_v36 }
 0x3a1   :  { %1071 = vmatprep.subr.bf16.mxu0 %v2788_v40  ;;  %1112 = vmatprep.subr.bf16.mxu1 %v2790_v41 }
 0x3a4   :  { %1072 = vmatpush1.bf16.msra.mxu0 %v2796_v42  ;;  %1113 = vmatpush1.bf16.msra.mxu1 %v2798_v43 }
 0x3a5   :  { %1166 = vmatprep.subr.bf16.mxu0 %v2660_v5  ;;  %1207 = vmatprep.subr.bf16.mxu1 %v2663_v6 }
 0x447   :  { %v982_v11 = vpop.f32.mrf.mxu0  ;;  %v1023_v32 = vpop.f32.mrf.mxu1 }
 0x448   :  { %v1030_v47 = vadd.f32 %v982_v11, %v2869_v24  ;;  %v1032_v56 = vadd.f32 %v1023_v32, %v2872_v26 }
 0x449   :  { %v984_v46 = vpop.f32.mrf.mxu0  ;;  %v1025_v44 = vpop.f32.mrf.mxu1 }
 0x44a   :  { %v1034_v1 = vmul.f32 0.5, %v1030_v47  ;;  %v1031_v20 = vadd.f32 %v984_v46, %v2874_v34  ;;  %v1033_v21 = vadd.f32 %v1025_v44, %v2877_v37  ;;  %v3280_v46 = vld [vmem:[#allocation20_spill] sm:$0xff] }
 0x44b   :  { %v986_v28 = vpop.f32.mrf.mxu0  ;;  %v1027_v61 = vpop.f32.mrf.mxu1 }
 0x44c   :  { %2254 = vtanh.f32 %v1034_v1  ;;  %v1038_v0 = vmul.f32 0.5, %v1031_v20  ;;  %v1043_v7 = vmul.f32 0.5, %v1033_v21  ;;  %v3281_v61 = vld [vmem:[#allocation22_spill] sm:$0xff] }
 0x44d   :  { %v987_v9 = vpop.f32.mrf.mxu0  ;;  %v1028_v45 = vpop.f32.mrf.mxu1 }
 0x44e   :  { %2256 = vtanh.f32 %v1038_v0  ;;  %v3282_v45 = vld [vmem:[#allocation21_spill] sm:$0xff] }
 0x44f   :  { %2258 = vtanh.f32 %v1032_v56 }
 0x450   :  { %2260 = vtanh.f32 %v1043_v7 }
 0x459   :  { %v2255_v15 = vpop.eup %2254 }
 0x45a   :  { %v1036_v24 = vmul.f32 0.5, %v2255_v15 }
 0x45b   :  { %v2257_v48 = vpop.eup %2256 }
 0x45c   :  { %v1037_v53 = vadd.f32 0.5, %v1036_v24  ;;  %v1040_v50 = vmul.f32 0.5, %v2257_v48  ;;  %v2259_v34 = vpop.eup %2258 }
 0x45d   :  { %v2261_v17 = vpop.eup %2260 }
 0x45e   :  { %v1041_v58 = vadd.f32 0.5, %v1040_v50  ;;  %v1048_v10 = vmul.f32 %v2259_v34, %v1037_v53  ;;  %v1045_v57 = vmul.f32 0.5, %v2261_v17 }
 0x460   :  { %v1047_v18 = vmul.f32 %v1041_v58, %v2977_v38  ;;  %v1046_v2 = vadd.f32 0.5, %v1045_v57 }
 0x462   :  { %v3019_v26 = vadd.f32 %v1048_v10, %v1047_v18 }
 0x464   :  { %2262 = vtanh.f32 %v3019_v26 }
 0x471   :  { %v2263_v37 = vpop.eup %2262 }
 0x472   :  { %v1051_v11 = vmul.f32 %v2263_v37, %v1046_v2 }
 0x474   :  { %v1056_v32 = vpack.c.bf16 %v1051_v11, %v1051_v11 }
 0x476   :  { %1090 = vmatmul.mubr.bf16.vlgmr.msra.gmra.mxu0 %v1056_v32  ;;  %1131 = vmatmul.mubr.bf16.vlgmr.msra.gmra.mxu1 %v1056_v32 }
 0x477   :  { %1167 = vmatpush1.bf16.msra.mxu0 %v2684_v51  ;;  %1208 = vmatpush1.bf16.msra.mxu1 %v2686_v52 }
 0x478   :  { %1168 = vmatprep.subr.bf16.mxu0 %v2688_v54  ;;  %1209 = vmatprep.subr.bf16.mxu1 %v2690_v55 }
 0x479   :  { %1198 = vmatprep.mubr.bf16.mxu0 %v3279_v63  ;;  %1239 = vmatprep.mubr.bf16.mxu1 %v3279_v63 }
 0x47b   :  { %1169 = vmatpush1.bf16.msra.mxu0 %v2698_v29  ;;  %1210 = vmatpush1.bf16.msra.mxu1 %v2700_v59 }
 0x47c   :  { %1170 = vmatprep.subr.bf16.mxu0 %v2704_v60  ;;  %1211 = vmatprep.subr.bf16.mxu1 %v2707_v62 }
 0x47f   :  { %1171 = vmatpush1.bf16.msra.mxu0 %v2716_v3  ;;  %1212 = vmatpush1.bf16.msra.mxu1 %v2718_v4 }
 0x480   :  { %1172 = vmatprep.subr.bf16.mxu0 %v2722_v39  ;;  %1213 = vmatprep.subr.bf16.mxu1 %v2724_v8 }
 0x483   :  { %1173 = vmatpush1.bf16.msra.mxu0 %v2732_v12  ;;  %1214 = vmatpush1.bf16.msra.mxu1 %v2734_v13 }
 0x484   :  { %1174 = vmatprep.subr.bf16.mxu0 %v2738_v14  ;;  %1215 = vmatprep.subr.bf16.mxu1 %v2741_v16 }
 0x487   :  { %1175 = vmatpush1.bf16.msra.mxu0 %v2750_v22  ;;  %1216 = vmatpush1.bf16.msra.mxu1 %v2752_v23 }
 0x488   :  { %1176 = vmatprep.subr.bf16.mxu0 %v2756_v49  ;;  %1217 = vmatprep.subr.bf16.mxu1 %v2758_v25 }
 0x48b   :  { %1177 = vmatpush1.bf16.msra.mxu0 %v2766_v27  ;;  %1218 = vmatpush1.bf16.msra.mxu1 %v2768_v30 }
 0x48c   :  { %1178 = vmatprep.subr.bf16.mxu0 %v2772_v31  ;;  %1219 = vmatprep.subr.bf16.mxu1 %v2775_v33 }
 0x48f   :  { %1179 = vmatpush1.bf16.msra.mxu0 %v2782_v35  ;;  %1220 = vmatpush1.bf16.msra.mxu1 %v2784_v36 }
 0x490   :  { %1180 = vmatprep.subr.bf16.mxu0 %v2788_v40  ;;  %1221 = vmatprep.subr.bf16.mxu1 %v2790_v41 }
 0x493   :  { %1181 = vmatpush1.bf16.msra.mxu0 %v2796_v42  ;;  %1222 = vmatpush1.bf16.msra.mxu1 %v2798_v43 }
 0x494   :  { %1275 = vmatprep.subr.bf16.mxu0 %v2660_v5  ;;  %1316 = vmatprep.subr.bf16.mxu1 %v2663_v6  ;;  %v3283_v5 = vld [vmem:[#allocation23_spill] sm:$0xff] }
 0x536   :  { %v1091_v38 = vpop.f32.mrf.mxu0  ;;  %v1132_v47 = vpop.f32.mrf.mxu1 }
 0x537   :  { %v1139_v44 = vadd.f32 %v1091_v38, %v3280_v46  ;;  %v1141_v21 = vadd.f32 %v1132_v47, %v3282_v45 }
 0x538   :  { %v1093_v1 = vpop.f32.mrf.mxu0  ;;  %v1134_v20 = vpop.f32.mrf.mxu1 }
 0x539   :  { %v1143_v28 = vmul.f32 0.5, %v1139_v44  ;;  %v1140_v56 = vadd.f32 %v1093_v1, %v3281_v61  ;;  %v1142_v6 = vadd.f32 %v1134_v20, %v3283_v5  ;;  %v3286_v1 = vld [vmem:[#allocation25_spill] sm:$0xff] }
 0x53a   :  { %v1095_v0 = vpop.f32.mrf.mxu0  ;;  %v1136_v9 = vpop.f32.mrf.mxu1 }
 0x53b   :  { %2264 = vtanh.f32 %v1143_v28  ;;  %v1147_v7 = vmul.f32 0.5, %v1140_v56  ;;  %v1152_v48 = vmul.f32 0.5, %v1142_v6  ;;  %v3287_v0 = vld [vmem:[#allocation27_spill] sm:$0xff] }
 0x53c   :  { %v1096_v15 = vpop.f32.mrf.mxu0  ;;  %v1137_v24 = vpop.f32.mrf.mxu1 }
 0x53d   :  { %2266 = vtanh.f32 %v1147_v7 }
 0x53e   :  { %2268 = vtanh.f32 %v1141_v21 }
 0x53f   :  { %2270 = vtanh.f32 %v1152_v48 }
 0x548   :  { %v2265_v53 = vpop.eup %2264 }
 0x549   :  { %v1145_v50 = vmul.f32 0.5, %v2265_v53 }
 0x54a   :  { %v2267_v34 = vpop.eup %2266 }
 0x54b   :  { %v1146_v58 = vadd.f32 0.5, %v1145_v50  ;;  %v1149_v10 = vmul.f32 0.5, %v2267_v34  ;;  %v2269_v18 = vpop.eup %2268 }
 0x54c   :  { %v2271_v11 = vpop.eup %2270 }
 0x54d   :  { %v1150_v17 = vadd.f32 0.5, %v1149_v10  ;;  %v1157_v57 = vmul.f32 %v2269_v18, %v1146_v58  ;;  %v1154_v32 = vmul.f32 0.5, %v2271_v11  ;;  %v3110_v11 = vld [vmem:[#allocation8 + $0xe0] ss:$16 sps:$4 sm:$0xff]  }
 0x54f   :  { %v1156_v2 = vmul.f32 %v1150_v17, %v3019_v26  ;;  %v1155_v38 = vadd.f32 0.5, %v1154_v32  ;;  %v3113_v32 = vld [vmem:[#allocation8 + $0xe8] ss:$16 sps:$4 sm:$0xff]  }
 0x551   :  { %v3061_v37 = vadd.f32 %v1157_v57, %v1156_v2 }
 0x553   :  { %2272 = vtanh.f32 %v3061_v37 }
 0x560   :  { %v2273_v47 = vpop.eup %2272 }
 0x561   :  { %v1160_v46 = vmul.f32 %v2273_v47, %v1155_v38  ;;  %v3119_v38 = vld [vmem:[#allocation8 + $0xcc] ss:$16 sps:$4 sm:$0xff]   ;;  %v3124_v47 = vld [vmem:[#allocation8 + $0xc0] ss:$16 sps:$4 sm:$0xff]  }
 0x563   :  { %v1165_v44 = vpack.c.bf16 %v1160_v46, %v1160_v46  ;;  %v3127_v46 = vld [vmem:[#allocation8 + $0xc8] ss:$16 sps:$4 sm:$0xff]  }
 0x565   :  { %1199 = vmatmul.mubr.bf16.vlgmr.msra.gmra.mxu0 %v1165_v44  ;;  %1240 = vmatmul.mubr.bf16.vlgmr.msra.gmra.mxu1 %v1165_v44  ;;  %v3130_v44 = vld [vmem:[#allocation8 + $0xa4] ss:$16 sps:$4 sm:$0xff]  }
 0x566   :  { %1276 = vmatpush1.bf16.msra.mxu0 %v2684_v51  ;;  %1317 = vmatpush1.bf16.msra.mxu1 %v2686_v52  ;;  %v3096_v51 = vld [vmem:[#allocation8 + $0xe4] ss:$16 sps:$4 sm:$0xff]   ;;  %v3099_v52 = vld [vmem:[#allocation8 + $0xec] ss:$16 sps:$4 sm:$0xff]  }
 0x567   :  { %1277 = vmatprep.subr.bf16.mxu0 %v2688_v54  ;;  %1318 = vmatprep.subr.bf16.mxu1 %v2690_v55 }
 0x568   :  { %1307 = vmatprep.mubr.bf16.mxu0 %v3279_v63  ;;  %1348 = vmatprep.mubr.bf16.mxu1 %v3279_v63 }
 0x56a   :  { %1278 = vmatpush1.bf16.msra.mxu0 %v2698_v29  ;;  %1319 = vmatpush1.bf16.msra.mxu1 %v2700_v59  ;;  %v3284_v29 = vld [vmem:[#allocation24_spill] sm:$0xff] }
 0x56b   :  { %1279 = vmatprep.subr.bf16.mxu0 %v2704_v60  ;;  %1320 = vmatprep.subr.bf16.mxu1 %v2707_v62 }
 0x56e   :  { %1280 = vmatpush1.bf16.msra.mxu0 %v2716_v3  ;;  %1321 = vmatpush1.bf16.msra.mxu1 %v2718_v4  ;;  %v3285_v4 = vld [vmem:[#allocation26_spill] sm:$0xff] }
 0x56f   :  { %1281 = vmatprep.subr.bf16.mxu0 %v2722_v39  ;;  %1322 = vmatprep.subr.bf16.mxu1 %v2724_v8 }
 0x572   :  { %1282 = vmatpush1.bf16.msra.mxu0 %v2732_v12  ;;  %1323 = vmatpush1.bf16.msra.mxu1 %v2734_v13 }
 0x573   :  { %1283 = vmatprep.subr.bf16.mxu0 %v2738_v14  ;;  %1324 = vmatprep.subr.bf16.mxu1 %v2741_v16 }
 0x576   :  { %1284 = vmatpush1.bf16.msra.mxu0 %v2750_v22  ;;  %1325 = vmatpush1.bf16.msra.mxu1 %v2752_v23 }
 0x577   :  { %1285 = vmatprep.subr.bf16.mxu0 %v2756_v49  ;;  %1326 = vmatprep.subr.bf16.mxu1 %v2758_v25 }
 0x57a   :  { %1286 = vmatpush1.bf16.msra.mxu0 %v2766_v27  ;;  %1327 = vmatpush1.bf16.msra.mxu1 %v2768_v30 }
 0x57b   :  { %1287 = vmatprep.subr.bf16.mxu0 %v2772_v31  ;;  %1328 = vmatprep.subr.bf16.mxu1 %v2775_v33 }
 0x57e   :  { %1288 = vmatpush1.bf16.msra.mxu0 %v2782_v35  ;;  %1329 = vmatpush1.bf16.msra.mxu1 %v2784_v36 }
 0x57f   :  { %1289 = vmatprep.subr.bf16.mxu0 %v2788_v40  ;;  %1330 = vmatprep.subr.bf16.mxu1 %v2790_v41 }
 0x582   :  { %1290 = vmatpush1.bf16.msra.mxu0 %v2796_v42  ;;  %1331 = vmatpush1.bf16.msra.mxu1 %v2798_v43 }
 0x583   :  { %1384 = vmatprep.subr.bf16.mxu0 %v3096_v51  ;;  %1425 = vmatprep.subr.bf16.mxu1 %v3099_v52 }
 0x625   :  { %v1200_v54 = vpop.f32.mrf.mxu0  ;;  %v1241_v55 = vpop.f32.mrf.mxu1 }
 0x626   :  { %v1248_v59 = vadd.f32 %v1200_v54, %v3284_v29  ;;  %v1250_v20 = vadd.f32 %v1241_v55, %v3286_v1  ;;  %v3133_v54 = vld [vmem:[#allocation8 + $0xac] ss:$16 sps:$4 sm:$0xff]   ;;  %v3136_v55 = vld [vmem:[#allocation8 + $0xa0] ss:$16 sps:$4 sm:$0xff]   ;;  %v3139_v29 = vld [vmem:[#allocation8 + $0xa8] ss:$16 sps:$4 sm:$0xff]  }
 0x627   :  { %v1202_v60 = vpop.f32.mrf.mxu0  ;;  %v1243_v62 = vpop.f32.mrf.mxu1 }
 0x628   :  { %v1252_v3 = vmul.f32 0.5, %v1248_v59  ;;  %v1249_v39 = vadd.f32 %v1202_v60, %v3285_v4  ;;  %v1251_v9 = vadd.f32 %v1243_v62, %v3287_v0  ;;  %v3142_v59 = vld [vmem:[#allocation8 + $0x84] ss:$16 sps:$4 sm:$0xff]   ;;  %v3145_v60 = vld [vmem:[#allocation8 + $0x8c] ss:$16 sps:$4 sm:$0xff]  }
 0x629   :  { %v1204_v8 = vpop.f32.mrf.mxu0  ;;  %v1245_v26 = vpop.f32.mrf.mxu1 }
 0x62a   :  { %2274 = vtanh.f32 %v1252_v3  ;;  %v1256_v28 = vmul.f32 0.5, %v1249_v39  ;;  %v1261_v45 = vmul.f32 0.5, %v1251_v9 }
 0x62b   :  { %v1205_v61 = vpop.f32.mrf.mxu0  ;;  %v1246_v56 = vpop.f32.mrf.mxu1 }
 0x62c   :  { %2276 = vtanh.f32 %v1256_v28 }
 0x62d   :  { %2278 = vtanh.f32 %v1250_v20 }
 0x62e   :  { %2280 = vtanh.f32 %v1261_v45 }
 0x637   :  { %v2275_v21 = vpop.eup %2274 }
 0x638   :  { %v1254_v7 = vmul.f32 0.5, %v2275_v21 }
 0x639   :  { %v2277_v15 = vpop.eup %2276 }
 0x63a   :  { %v1255_v24 = vadd.f32 0.5, %v1254_v7  ;;  %v1258_v5 = vmul.f32 0.5, %v2277_v15  ;;  %v2279_v6 = vpop.eup %2278  ;;  %v2328_v7 = vld [vmem:[#allocation8 + $0x80] ss:$16 sps:$4 sm:$0xff]   ;;  %v2329_v15 = vld [vmem:[#allocation8 + $0x88] ss:$16 sps:$4 sm:$0xff]  }
 0x63b   :  { %v2281_v58 = vpop.eup %2280 }
 0x63c   :  { %v1259_v48 = vadd.f32 0.5, %v1258_v5  ;;  %v1266_v53 = vmul.f32 %v2279_v6, %v1255_v24  ;;  %v1263_v10 = vmul.f32 0.5, %v2281_v58  ;;  %v2331_v24 = vld [vmem:[#allocation8 + $0x6c] ss:$16 sps:$4 sm:$0xff]   ;;  %v2332_v5 = vld [vmem:[#allocation8 + $0x60] ss:$16 sps:$4 sm:$0xff]  }
 0x63d   :  { %v2333_v6 = vld [vmem:[#allocation8 + $0x68] ss:$16 sps:$4 sm:$0xff]   ;;  %v2338_v58 = vld [vmem:[#allocation8 + $0x24] ss:$16 sps:$4 sm:$0xff]  }
 0x63e   :  { %v1265_v50 = vmul.f32 %v1259_v48, %v3061_v37  ;;  %v1264_v18 = vadd.f32 0.5, %v1263_v10  ;;  %v3116_v37 = vld [vmem:[#allocation8 + $0xc4] ss:$16 sps:$4 sm:$0xff]   ;;  %v2339_v10 = vld [vmem:[#allocation8 + $0x2c] ss:$16 sps:$4 sm:$0xff]  }
 0x63f   :  { %v2334_v48 = vld [vmem:[#allocation8 + $0x44] ss:$16 sps:$4 sm:$0xff]  }
 0x640   :  { %v3107_v34 = vadd.f32 %v1266_v53, %v1265_v50  ;;  %v2335_v53 = vld [vmem:[#allocation8 + $0x4c] ss:$16 sps:$4 sm:$0xff]   ;;  %v2336_v50 = vld [vmem:[#allocation8 + $0x40] ss:$16 sps:$4 sm:$0xff]  }
 0x642   :  { %2282 = vtanh.f32 %v3107_v34 }
 0x64f   :  { %v2283_v17 = vpop.eup %2282 }
 0x650   :  { %v1269_v57 = vmul.f32 %v2283_v17, %v1264_v18  ;;  %v2340_v18 = vld [vmem:[#allocation8 + $0x20] ss:$16 sps:$4 sm:$0xff]   ;;  %v2341_v17 = vld [vmem:[#allocation8 + $0x28] ss:$16 sps:$4 sm:$0xff]  }
 0x652   :  { %v1274_v2 = vpack.c.bf16 %v1269_v57, %v1269_v57  ;;  %v2342_v57 = vld [vmem:[#allocation8 + $0x4] ss:$16 sps:$4 sm:$0xff]  }
 0x654   :  { %1308 = vmatmul.mubr.bf16.vlgmr.msra.gmra.mxu0 %v1274_v2  ;;  %1349 = vmatmul.mubr.bf16.vlgmr.msra.gmra.mxu1 %v1274_v2  ;;  %v2343_v2 = vld [vmem:[#allocation8 + $0xc] ss:$16 sps:$4 sm:$0xff]  }
 0x655   :  { %1385 = vmatpush1.bf16.msra.mxu0 %v3110_v11  ;;  %1426 = vmatpush1.bf16.msra.mxu1 %v3113_v32 }
 0x656   :  { %1386 = vmatprep.subr.bf16.mxu0 %v3116_v37  ;;  %1427 = vmatprep.subr.bf16.mxu1 %v3119_v38 }
 0x657   :  { %1416 = vmatprep.mubr.bf16.mxu0 %v3279_v63  ;;  %1457 = vmatprep.mubr.bf16.mxu1 %v3279_v63 }
 0x659   :  { %1387 = vmatpush1.bf16.msra.mxu0 %v3124_v47  ;;  %1428 = vmatpush1.bf16.msra.mxu1 %v3127_v46 }
 0x65a   :  { %1388 = vmatprep.subr.bf16.mxu0 %v3130_v44  ;;  %1429 = vmatprep.subr.bf16.mxu1 %v3133_v54 }
 0x65d   :  { %1389 = vmatpush1.bf16.msra.mxu0 %v3136_v55  ;;  %1430 = vmatpush1.bf16.msra.mxu1 %v3139_v29 }
 0x65e   :  { %1390 = vmatprep.subr.bf16.mxu0 %v3142_v59  ;;  %1431 = vmatprep.subr.bf16.mxu1 %v3145_v60 }
 0x661   :  { %1391 = vmatpush1.bf16.msra.mxu0 %v2732_v12  ;;  %1432 = vmatpush1.bf16.msra.mxu1 %v2734_v13 }
 0x662   :  { %1392 = vmatprep.subr.bf16.mxu0 %v2738_v14  ;;  %1433 = vmatprep.subr.bf16.mxu1 %v2741_v16  ;;  %v3288_v14 = vld [vmem:[#allocation28_spill] sm:$0xff] }
 0x665   :  { %1393 = vmatpush1.bf16.msra.mxu0 %v2750_v22  ;;  %1434 = vmatpush1.bf16.msra.mxu1 %v2752_v23 }
 0x666   :  { %1394 = vmatprep.subr.bf16.mxu0 %v2756_v49  ;;  %1435 = vmatprep.subr.bf16.mxu1 %v2758_v25  ;;  %v3289_v25 = vld [vmem:[#allocation30_spill] sm:$0xff] }
 0x669   :  { %1395 = vmatpush1.bf16.msra.mxu0 %v2766_v27  ;;  %1436 = vmatpush1.bf16.msra.mxu1 %v2768_v30 }
 0x66a   :  { %1396 = vmatprep.subr.bf16.mxu0 %v2772_v31  ;;  %1437 = vmatprep.subr.bf16.mxu1 %v2775_v33  ;;  %v3290_v33 = vld [vmem:[#allocation29_spill] sm:$0xff] }
 0x66d   :  { %1397 = vmatpush1.bf16.msra.mxu0 %v2782_v35  ;;  %1438 = vmatpush1.bf16.msra.mxu1 %v2784_v36 }
 0x66e   :  { %1398 = vmatprep.subr.bf16.mxu0 %v2788_v40  ;;  %1439 = vmatprep.subr.bf16.mxu1 %v2790_v41 }
 0x671   :  { %1399 = vmatpush1.bf16.msra.mxu0 %v2796_v42  ;;  %1440 = vmatpush1.bf16.msra.mxu1 %v2798_v43  ;;  %v3291_v42 = vld [vmem:[#allocation31_spill] sm:$0xff] }
 0x672   :  { %1493 = vmatprep.subr.bf16.mxu0 %v3096_v51  ;;  %1534 = vmatprep.subr.bf16.mxu1 %v3099_v52 }
 0x714   :  { %v1309_v12 = vpop.f32.mrf.mxu0  ;;  %v1350_v13 = vpop.f32.mrf.mxu1 }
 0x715   :  { %v1357_v16 = vadd.f32 %v1309_v12, %v3288_v14  ;;  %v1359_v35 = vadd.f32 %v1350_v13, %v3290_v33  ;;  %v3294_v13 = vld [vmem:[#allocation33_spill] sm:$0xff] }
 0x716   :  { %v1311_v22 = vpop.f32.mrf.mxu0  ;;  %v1352_v23 = vpop.f32.mrf.mxu1 }
 0x717   :  { %v1361_v49 = vmul.f32 0.5, %v1357_v16  ;;  %v1358_v27 = vadd.f32 %v1311_v22, %v3289_v25  ;;  %v1360_v43 = vadd.f32 %v1352_v23, %v3291_v42 }
 0x718   :  { %v1313_v30 = vpop.f32.mrf.mxu0  ;;  %v1354_v31 = vpop.f32.mrf.mxu1 }
 0x719   :  { %2284 = vtanh.f32 %v1361_v49  ;;  %v1365_v36 = vmul.f32 0.5, %v1358_v27  ;;  %v1370_v51 = vmul.f32 0.5, %v1360_v43  ;;  %v3295_v49 = vld [vmem:[#allocation35_spill] sm:$0xff] }
 0x71a   :  { %v1314_v40 = vpop.f32.mrf.mxu0  ;;  %v1355_v41 = vpop.f32.mrf.mxu1 }
 0x71b   :  { %2286 = vtanh.f32 %v1365_v36 }
 0x71c   :  { %2288 = vtanh.f32 %v1359_v35 }
 0x71d   :  { %2290 = vtanh.f32 %v1370_v51 }
 0x726   :  { %v2285_v52 = vpop.eup %2284 }
 0x727   :  { %v1363_v62 = vmul.f32 0.5, %v2285_v52 }
 0x728   :  { %v2287_v3 = vpop.eup %2286 }
 0x729   :  { %v1364_v4 = vadd.f32 0.5, %v1363_v62  ;;  %v1367_v39 = vmul.f32 0.5, %v2287_v3  ;;  %v2289_v8 = vpop.eup %2288 }
 0x72a   :  { %v2291_v61 = vpop.eup %2290 }
 0x72b   :  { %v1368_v26 = vadd.f32 0.5, %v1367_v39  ;;  %v1375_v1 = vmul.f32 %v2289_v8, %v1364_v4  ;;  %v1372_v56 = vmul.f32 0.5, %v2291_v61  ;;  %v2197_v61 = vld [vmem:[#allocation9 + $0x20] sm:$0xff]  }
 0x72d   :  { %v1374_v20 = vmul.f32 %v1368_v26, %v3107_v34  ;;  %v1373_v0 = vadd.f32 0.5, %v1372_v56  ;;  %v2337_v34 = vld [vmem:[#allocation8 + $0x48] ss:$16 sps:$4 sm:$0xff]  }
 0x72e   :  { %v2194_v26 = vld [vmem:[#allocation9 + $0x38] sm:$0xff]  }
 0x72f   :  { %v3173_v28 = vadd.f32 %v1375_v1, %v1374_v20  ;;  %v2509_v1 = vmov 0.0   ;;  %v2195_v20 = vld [vmem:[#allocation9 + $0x30] sm:$0xff]   ;;  %v2198_v56 = vld [vmem:[#allocation9 + $0x18] sm:$0xff]  }
 0x731   :  { %2292 = vtanh.f32 %v3173_v28 }
 0x73e   :  { %v2293_v9 = vpop.eup %2292 }
 0x73f   :  { %v1378_v45 = vmul.f32 %v2293_v9, %v1373_v0  ;;  %v2199_v0 = vld [vmem:[#allocation9 + $0x10] sm:$0xff]   ;;  %v2200_v9 = vld [vmem:[#allocation9 + $0x8] sm:$0xff]  }
 0x741   :  { %v1383_v21 = vpack.c.bf16 %v1378_v45, %v1378_v45  ;;  %v2201_v45 = vld [vmem:[#allocation9] sm:$0xff]  }
 0x743   :  { %1417 = vmatmul.mubr.bf16.vlgmr.msra.gmra.mxu0 %v1383_v21  ;;  %1458 = vmatmul.mubr.bf16.vlgmr.msra.gmra.mxu1 %v1383_v21  ;;  %v2202_v21 = vld [vmem:[#allocation11 + $0x38] sm:$0xff]  }
 0x744   :  { %1494 = vmatpush1.bf16.msra.mxu0 %v3110_v11  ;;  %1535 = vmatpush1.bf16.msra.mxu1 %v3113_v32  ;;  %v2344_v11 = vld [vmem:[#allocation8] ss:$16 sps:$4 sm:$0xff]   ;;  %v2345_v32 = vld [vmem:[#allocation8 + $0x8] ss:$16 sps:$4 sm:$0xff]  }
 0x745   :  { %1495 = vmatprep.subr.bf16.mxu0 %v3116_v37  ;;  %1536 = vmatprep.subr.bf16.mxu1 %v3119_v38 }
 0x746   :  { %1525 = vmatprep.mubr.bf16.mxu0 %v3279_v63  ;;  %1566 = vmatprep.mubr.bf16.mxu1 %v3279_v63  ;;  %v2330_v63 = vld [vmem:[#allocation8 + $0x64] ss:$16 sps:$4 sm:$0xff]  }
 0x748   :  { %1496 = vmatpush1.bf16.msra.mxu0 %v3124_v47  ;;  %1537 = vmatpush1.bf16.msra.mxu1 %v3127_v46  ;;  %v3292_v47 = vld [vmem:[#allocation32_spill] sm:$0xff] }
 0x749   :  { %1497 = vmatprep.subr.bf16.mxu0 %v3130_v44  ;;  %1538 = vmatprep.subr.bf16.mxu1 %v3133_v54 }
 0x74c   :  { %1498 = vmatpush1.bf16.msra.mxu0 %v3136_v55  ;;  %1539 = vmatpush1.bf16.msra.mxu1 %v3139_v29  ;;  %v3293_v29 = vld [vmem:[#allocation34_spill] sm:$0xff] }
 0x74d   :  { %1499 = vmatprep.subr.bf16.mxu0 %v3142_v59  ;;  %1540 = vmatprep.subr.bf16.mxu1 %v3145_v60 }
 0x750   :  { %1500 = vmatpush1.bf16.msra.mxu0 %v2328_v7  ;;  %1541 = vmatpush1.bf16.msra.mxu1 %v2329_v15  ;;  %v2203_v7 = vld [vmem:[#allocation11 + $0x30] sm:$0xff]   ;;  %v2204_v15 = vld [vmem:[#allocation11 + $0x28] sm:$0xff]  }
 0x751   :  { %1501 = vmatprep.subr.bf16.mxu0 %v2330_v63  ;;  %1542 = vmatprep.subr.bf16.mxu1 %v2331_v24  ;;  %v2205_v63 = vld [vmem:[#allocation11 + $0x20] sm:$0xff]   ;;  %v2206_v24 = vld [vmem:[#allocation11 + $0x18] sm:$0xff]  }
 0x754   :  { %1502 = vmatpush1.bf16.msra.mxu0 %v2332_v5  ;;  %1543 = vmatpush1.bf16.msra.mxu1 %v2333_v6  ;;  %v2207_v5 = vld [vmem:[#allocation11 + $0x10] sm:$0xff]  }
 0x755   :  { %1503 = vmatprep.subr.bf16.mxu0 %v2334_v48  ;;  %1544 = vmatprep.subr.bf16.mxu1 %v2335_v53  ;;  %v3296_v53 = vld [vmem:[#allocation36_spill] sm:$0xff] }
 0x758   :  { %1504 = vmatpush1.bf16.msra.mxu0 %v2336_v50  ;;  %1545 = vmatpush1.bf16.msra.mxu1 %v2337_v34 }
 0x759   :  { %1505 = vmatprep.subr.bf16.mxu0 %v2338_v58  ;;  %1546 = vmatprep.subr.bf16.mxu1 %v2339_v10 }
 0x75c   :  { %1506 = vmatpush1.bf16.msra.mxu0 %v2340_v18  ;;  %1547 = vmatpush1.bf16.msra.mxu1 %v2341_v17 }
 0x75d   :  { %1507 = vmatprep.subr.bf16.mxu0 %v2342_v57  ;;  %1548 = vmatprep.subr.bf16.mxu1 %v2343_v2  ;;  %v3297_v2 = vld [vmem:[#allocation37_spill] sm:$0xff] }
 0x760   :  { %1508 = vmatpush1.bf16.msra.mxu0 %v2344_v11  ;;  %1549 = vmatpush1.bf16.msra.mxu1 %v2345_v32 }
 0x761   :  { %2060 = vmatprep.subr.bf16.mxu0 %v2509_v1  ;;  %2080 = vmatprep.subr.bf16.mxu1 %v2509_v1 }
 0x803   :  { %v1418_v37 = vpop.f32.mrf.mxu0  ;;  %v1459_v38 = vpop.f32.mrf.mxu1 }
 0x804   :  { %v1466_v46 = vadd.f32 %v1418_v37, %v3292_v47  ;;  %v1468_v14 = vadd.f32 %v1459_v38, %v3294_v13  ;;  %v3298_v47 = vld [vmem:[#allocation38_spill] sm:$0xff] }
 0x805   :  { %v1420_v44 = vpop.f32.mrf.mxu0  ;;  %v1461_v54 = vpop.f32.mrf.mxu1 }
 0x806   :  { %v1470_v55 = vmul.f32 0.5, %v1466_v46  ;;  %v1467_v59 = vadd.f32 %v1420_v44, %v3293_v29  ;;  %v1469_v25 = vadd.f32 %v1461_v54, %v3295_v49 }
 0x807   :  { %v1422_v60 = vpop.f32.mrf.mxu0  ;;  %v1463_v12 = vpop.f32.mrf.mxu1 }
 0x808   :  { %2294 = vtanh.f32 %v1470_v55  ;;  %v1474_v16 = vmul.f32 0.5, %v1467_v59  ;;  %v1479_v27 = vmul.f32 0.5, %v1469_v25 }
 0x809   :  { %v1423_v22 = vpop.f32.mrf.mxu0  ;;  %v1464_v23 = vpop.f32.mrf.mxu1 }
 0x80a   :  { %2296 = vtanh.f32 %v1474_v16 }
 0x80b   :  { %2298 = vtanh.f32 %v1468_v14 }
 0x80c   :  { %2300 = vtanh.f32 %v1479_v27 }
 0x815   :  { %v2295_v30 = vpop.eup %2294 }
 0x816   :  { %v1472_v31 = vmul.f32 0.5, %v2295_v30 }
 0x817   :  { %v2297_v33 = vpop.eup %2296 }
 0x818   :  { %v1473_v35 = vadd.f32 0.5, %v1472_v31  ;;  %v1476_v36 = vmul.f32 0.5, %v2297_v33  ;;  %v2299_v40 = vpop.eup %2298  ;;  %v2208_v31 = vld [vmem:[#allocation11 + $0x8] sm:$0xff]   ;;  %v2209_v33 = vld [vmem:[#allocation11] sm:$0xff]  }
 0x819   :  { %v2301_v52 = vpop.eup %2300 }
 0x81a   :  { %v1477_v41 = vadd.f32 0.5, %v1476_v36  ;;  %v1484_v42 = vmul.f32 %v2299_v40, %v1473_v35  ;;  %v1481_v62 = vmul.f32 0.5, %v2301_v52  ;;  %v2210_v35 = vld [vmem:[#allocation12 + $0x38] sm:$0xff]   ;;  %v2211_v36 = vld [vmem:[#allocation12 + $0x30] sm:$0xff]   ;;  %v2212_v40 = vld [vmem:[#allocation12 + $0x28] sm:$0xff]  }
 0x81c   :  { %v1483_v43 = vmul.f32 %v1477_v41, %v3173_v28  ;;  %v1482_v3 = vadd.f32 0.5, %v1481_v62  ;;  %v2196_v28 = vld [vmem:[#allocation9 + $0x28] sm:$0xff]   ;;  %v2213_v41 = vld [vmem:[#allocation12 + $0x20] sm:$0xff]  }
 0x81e   :  { %v3195_v51 = vadd.f32 %v1484_v42, %v1483_v43  ;;  %v2214_v42 = vld [vmem:[#allocation12 + $0x18] sm:$0xff]   ;;  %v2215_v43 = vld [vmem:[#allocation12 + $0x10] sm:$0xff]  }
 0x820   :  { %2302 = vtanh.f32 %v3195_v51 }
 0x82d   :  { %v2303_v4 = vpop.eup %2302 }
 0x82e   :  { %v1487_v39 = vmul.f32 %v2303_v4, %v1482_v3 }
 0x830   :  { %v1492_v8 = vpack.c.bf16 %v1487_v39, %v1487_v39 }
 0x832   :  { %1526 = vmatmul.mubr.bf16.vlgmr.msra.gmra.mxu0 %v1492_v8  ;;  %1567 = vmatmul.mubr.bf16.vlgmr.msra.gmra.mxu1 %v1492_v8 }
 0x833   :  { %2061 = vmatpush3.bf16.msra.mxu0 %v2194_v26  ;;  %2076 = vmatprep.mubr.msk.bf16.mxu0 %vm2510_vm2, %v2509_v1 }
 0x834   :  { %2062 = vmatprep.subr.bf16.mxu0 %v2509_v1  ;;  %2096 = vmatprep.mubr.msk.bf16.mxu1 %vm2510_vm2, %v2509_v1 }
 0x835   :  { %2081 = vmatpush3.bf16.msra.mxu1 %v2202_v21 }
 0x836   :  { %2082 = vmatprep.subr.bf16.mxu1 %v2509_v1 }
 0x837   :  { %2063 = vmatpush3.bf16.msra.mxu0 %v2195_v20  ;;  %v2216_v20 = vld [vmem:[#allocation12 + $0x8] sm:$0xff]  }
 0x838   :  { %2064 = vmatprep.subr.bf16.mxu0 %v2509_v1 }
 0x839   :  { %2083 = vmatpush3.bf16.msra.mxu1 %v2203_v7 }
 0x83a   :  { %2084 = vmatprep.subr.bf16.mxu1 %v2509_v1 }
 0x83b   :  { %2065 = vmatpush3.bf16.msra.mxu0 %v2196_v28  ;;  %v2217_v28 = vld [vmem:[#allocation12] sm:$0xff]  }
 0x83c   :  { %2066 = vmatprep.subr.bf16.mxu0 %v2509_v1 }
 0x83d   :  { %2085 = vmatpush3.bf16.msra.mxu1 %v2204_v15 }
 0x83e   :  { %2086 = vmatprep.subr.bf16.mxu1 %v2509_v1 }
 0x83f   :  { %2067 = vmatpush3.bf16.msra.mxu0 %v2197_v61  ;;  %v2015_v61 = vld [vmem:[%s3254_s9] ss:$0 sm:$0xff]  ;;  %s2466_s9 = scalar_lea.vmem %s1943_s23, 128 }
 0x840   :  { %2068 = vmatprep.subr.bf16.mxu0 %v2509_v1  ;;  %p2467_p2 = scmp.ne.s32.totalorder %s1943_s23, %s2466_s9  ;;  %p2472_p4 = scmp.lt.s32.totalorder %s2466_s9, %s2466_s9 }
 0x841   :  { %2087 = vmatpush3.bf16.msra.mxu1 %v2205_v63  ;;  %v2024_v63 = vld [vmem:[%s3256_s11] ss:$0 sm:$0xff] }
 0x842   :  { %2088 = vmatprep.subr.bf16.mxu1 %v2509_v1  ;;  %p2473_p5 = por %p2472_p4, %p2471_p3 }
 0x843   :  { %2069 = vmatpush3.bf16.msra.mxu0 %v2198_v56 }
 0x844   :  { %2070 = vmatprep.subr.bf16.mxu0 %v2509_v1  ;;  %p2474_p6 = pnand %p2473_p5, %p2467_p2 }
 0x845   :  { %2089 = vmatpush3.bf16.msra.mxu1 %v2206_v24 }
 0x846   :  { %2090 = vmatprep.subr.bf16.mxu1 %v2509_v1 }
 0x847   :  { %2071 = vmatpush3.bf16.msra.mxu0 %v2199_v0 }
 0x848   :  { %2072 = vmatprep.subr.bf16.mxu0 %v2509_v1 }
 0x849   :  { %2091 = vmatpush3.bf16.msra.mxu1 %v2207_v5 }
 0x84a   :  { %2092 = vmatprep.subr.bf16.mxu1 %v2509_v1 }
 0x84b   :  { %2073 = vmatpush3.bf16.msra.mxu0 %v2200_v9 }
 0x84c   :  { %2074 = vmatprep.subr.bf16.mxu0 %v2509_v1 }
 0x84d   :  { %2093 = vmatpush3.bf16.msra.mxu1 %v2208_v31 }
 0x84e   :  { %2094 = vmatprep.subr.bf16.mxu1 %v2509_v1 }
 0x84f   :  { %2075 = vmatpush3.bf16.msra.mxu0 %v2201_v45 }
 0x850   :  { %2100 = vmatprep.subr.bf16.mxu0 %v2509_v1 }
 0x851   :  { %2095 = vmatpush3.bf16.msra.mxu1 %v2209_v33 }
 0x8f2   :  { %v1527_v6 = vpop.f32.mrf.mxu0  ;;  %v1568_v48 = vpop.f32.mrf.mxu1 }
 0x8f3   :  { %v1575_v50 = vadd.f32 %v1527_v6, %v3296_v53  ;;  %v1577_v11 = vadd.f32 %v1568_v48, %v3297_v2 }
 0x8f4   :  { %v1529_v34 = vpop.f32.mrf.mxu0  ;;  %v1570_v58 = vpop.f32.mrf.mxu1 }
 0x8f5   :  { %v1579_v10 = vmul.f32 0.5, %v1575_v50  ;;  %v1576_v18 = vadd.f32 %v1529_v34, %v2925_v19  ;;  %v1578_v46 = vadd.f32 %v1570_v58, %v3298_v47 }
 0x8f6   :  { %v1531_v17 = vpop.f32.mrf.mxu0  ;;  %v1572_v57 = vpop.f32.mrf.mxu1 }
 0x8f7   :  { %2304 = vtanh.f32 %v1579_v10  ;;  %v1583_v32 = vmul.f32 0.5, %v1576_v18  ;;  %v1588_v44 = vmul.f32 0.5, %v1578_v46 }
 0x8f8   :  { %v1532_v37 = vpop.f32.mrf.mxu0  ;;  %v1573_v38 = vpop.f32.mrf.mxu1 }
 0x8f9   :  { %2306 = vtanh.f32 %v1583_v32 }
 0x8fa   :  { %2308 = vtanh.f32 %v1577_v11 }
 0x8fb   :  { %2310 = vtanh.f32 %v1588_v44 }
 0x904   :  { %v2305_v54 = vpop.eup %2304 }
 0x905   :  { %v1581_v55 = vmul.f32 0.5, %v2305_v54 }
 0x906   :  { %v2307_v29 = vpop.eup %2306 }
 0x907   :  { %v1582_v59 = vadd.f32 0.5, %v1581_v55  ;;  %v1585_v60 = vmul.f32 0.5, %v2307_v29  ;;  %v2309_v19 = vpop.eup %2308 }
 0x908   :  { %v2311_v22 = vpop.eup %2310 }
 0x909   :  { %v1586_v12 = vadd.f32 0.5, %v1585_v60  ;;  %v1593_v13 = vmul.f32 %v2309_v19, %v1582_v59  ;;  %v1590_v23 = vmul.f32 0.5, %v2311_v22 }
 0x90b   :  { %v1592_v14 = vmul.f32 %v1586_v12, %v3195_v51  ;;  %v1591_v49 = vadd.f32 0.5, %v1590_v23  ;;  %v2006_v51 = vld [vmem:[%s3252_s7] ss:$0 sm:$0xff] }
 0x90d   :  { %v1594_v16 = vadd.f32 %v1593_v13, %v1592_v14 }
 0x90f   :  { %2312 = vtanh.f32 %v1594_v16 }
 0x91c   :  { %v2313_v25 = vpop.eup %2312 }
 0x91d   :  { %v1596_v27 = vmul.f32 %v2313_v25, %v1591_v49 }
 0x91f   :  { %v1597_v30 = vpack.c.bf16 %v1596_v27, %v1596_v27 }
 0x921   :  { %2077 = vmatmul.mubr.bf16.vlgmr.msra.gmra.mxu0 %v1597_v30 }
 0x922   :  { %2116 = vmatprep.mubr.msk.bf16.mxu0 %vm2510_vm2, %v2509_v1  ;;  %2101 = vmatpush3.bf16.msra.mxu0 %v2210_v35 }
 0x923   :  { %2102 = vmatprep.subr.bf16.mxu0 %v2509_v1 }
 0x926   :  { %2103 = vmatpush3.bf16.msra.mxu0 %v2211_v36 }
 0x927   :  { %2104 = vmatprep.subr.bf16.mxu0 %v2509_v1 }
 0x92a   :  { %2105 = vmatpush3.bf16.msra.mxu0 %v2212_v40 }
 0x92b   :  { %2106 = vmatprep.subr.bf16.mxu0 %v2509_v1 }
 0x92e   :  { %2107 = vmatpush3.bf16.msra.mxu0 %v2213_v41 }
 0x92f   :  { %2108 = vmatprep.subr.bf16.mxu0 %v2509_v1 }
 0x932   :  { %2109 = vmatpush3.bf16.msra.mxu0 %v2214_v42 }
 0x933   :  { %2110 = vmatprep.subr.bf16.mxu0 %v2509_v1 }
 0x936   :  { %2111 = vmatpush3.bf16.msra.mxu0 %v2215_v43 }
 0x937   :  { %2112 = vmatprep.subr.bf16.mxu0 %v2509_v1 }
 0x93a   :  { %2113 = vmatpush3.bf16.msra.mxu0 %v2216_v20 }
 0x93b   :  { %2114 = vmatprep.subr.bf16.mxu0 %v2509_v1 }
 0x93e   :  { %2115 = vmatpush3.bf16.msra.mxu0 %v2217_v28 }
 0x9e1   :  { %v1703_v52 = vpop.f32.mrf.mxu0 }
 0x9e2   :  { %v1704_v62 = vadd.f32 %v2006_v51, %v1703_v52 }
 0x9e3   :  { %v2078_v3 = vpop.f32.mrf.mxu0 }
 0x9e4   :  { %v1709_v4 = vmax.f32 %v1704_v62, 0.0 }
 0x9e5   :  { %v1706_v39 = vpop.f32.mrf.mxu0 }
 0x9e6   :  { %v1710_v8 = vpack.c.bf16 %v1709_v4, %v1709_v4 }
 0x9e7   :  { %v2079_v26 = vpop.f32.mrf.mxu0 }
 0x9e8   :  { %2097 = vmatmul.mubr.bf16.vlgmr.msra.gmra.mxu1 %v1710_v8 }
 0xaa8   :  { %v1816_v56 = vpop.f32.mrf.mxu1 }
 0xaa9   :  { %v1817_v0 = vadd.f32 %v2015_v61, %v1816_v56 }
 0xaaa   :  { %v2098_v9 = vpop.f32.mrf.mxu1 }
 0xaab   :  { %v1822_v45 = vmax.f32 %v1817_v0, 0.0 }
 0xaac   :  { %v1819_v21 = vpop.f32.mrf.mxu1 }
 0xaad   :  { %v1823_v7 = vpack.c.bf16 %v1822_v45, %v1822_v45 }
 0xaae   :  { %v2099_v15 = vpop.f32.mrf.mxu1 }
 0xaaf   :  { %2117 = vmatmul.mubr.bf16.vlgmr.msra.gmra.mxu0 %v1823_v7 }
 0xb6f   :  { %v1929_v1 = vpop.f32.mrf.mxu0 }
 0xb70   :  { %v1930_v24 = vadd.f32 %v2024_v63, %v1929_v1 }
 0xb71   :  { %v2118_v5 = vpop.f32.mrf.mxu0 }
 0xb72   :  { %1935 = vst [vmem:[#allocation14] sm:$0xff] %v1930_v24 }
 0xb73   :  { %v1932_v6 = vpop.f32.mrf.mxu0 }
 0xb74   :  { %2477 = shalt.err (!%p2474_p6)
}
 0xb75   :  { %1945 = dma.vmem_to_hbm [thread:$0]  %s1943_s23, 128, %s3257_s12, [#allocation5]   ;;  %v2119_v48 = vpop.f32.mrf.mxu0 }
 0xb76   :  { %2494 = dma.done.wait [#allocation5], 128  }
 0xb77   :  { %2495 = vsyncadd [#allocation5], 4294967168 }
 0xb78   :  { %1949 = vsyncpa [#allocation4], 1 }
 0xb79   :  { %1950 = vsyncpa [#allocation7], 1 }
 0xb7a   :  { %1951 = vsyncpa [#allocation10], 1 }
 0xb7b   :  { %1952 = vsyncpa [#allocation13], 1 }
 0xb7c   :  { %1953 = vsyncpa [#allocation5], 1 }

</bundles_post_ra>
